<compile_context>
chip_gen: v6e
topology: v6e:2x2x1
jax: 0.10.0
libtpu: 0.0.40
codegen_flags: <defaults>
</compile_context>

<pallas_src>
import functools

import jax
import jax.numpy as jnp
from jax.experimental import pallas as pl
from jax.experimental.pallas import tpu as pltpu

_LANE = 128      # TPU lane width
_EPS = 1e-5      # BatchNorm1d eps


def _round_up(x, m):
    return (x + m - 1) // m * m


# ----------------------------- kernel helpers ------------------------------

def _elu(x):
    # F.elu with alpha=1.0, in f32.
    return jnp.where(x > 0, x, jnp.exp(jnp.minimum(x, 0.0)) - 1.0)


def _batch_norm(x):
    # Training-mode BatchNorm1d over rows, biased variance, gamma=1 / beta=0.
    # One-pass statistics + EUP rsqrt, all in f32.
    mean = jnp.mean(x, axis=0, keepdims=True)
    mean_sq = jnp.mean(x * x, axis=0, keepdims=True)
    var = jnp.maximum(mean_sq - mean * mean, 0.0)
    return (x - mean) * jax.lax.rsqrt(var + _EPS)


def _dotf(a, b):
    # bf16-fed MXU matmul with f32 accumulation.
    return jnp.dot(a.astype(jnp.bfloat16), b.astype(jnp.bfloat16),
                   preferred_element_type=jnp.float32)


# ------------------------------- kernels ------------------------------------

def _inet_kernel(B, N, E,
                 x_ref, rr_ref, rs_ref, rrt_ref,
                 w11, b11, w12, b12,
                 w21s, w21r, b21, w22, b22,
                 w31, b31, w32, b32,
                 w41s, w41r, w41k, b41, w42, b42,
                 out_ref,
                 h1_ref, snd_ref, rcv_ref, xs_ref, nd_ref):
    """Whole InteractionNet trunk (everything up to and incl. MLP4's BN)."""

    def two_layer(x, w1, b1, w2, b2):
        h = _elu(_dotf(x, w1[...]) + b1[...])
        # dropout(do_prob=0.0) == identity
        h = _elu(_dotf(h, w2[...]) + b2[...])
        return _batch_norm(h)

    # --- MLP1 on every (t, b, n) row; BN stats over all T*B*N rows ----------
    h1_ref[...] = two_layer(x_ref[...], w11, b11, w12, b12)

    bn_rows = B * N
    # --- node2edge_temp: per-batch [E,N]@[N,HP] dots (no kron, no B^2) ------
    for b in range(B):
        x1_b = h1_ref[pl.ds(b * N, N), :]               # t = 0 nodes, batch b
        x2_b = h1_ref[pl.ds(bn_rows + b * N, N), :]     # t = 1 nodes, batch b
        snd_ref[pl.ds(b * E, E), :] = _dotf(rs_ref[...], x1_b)
        rcv_ref[pl.ds(b * E, E), :] = _dotf(rr_ref[...], x2_b)

    # --- MLP2 (cat([senders, receivers]) folded into split weights) ---------
    h2 = _elu(_dotf(snd_ref[...], w21s[...]) + _dotf(rcv_ref[...], w21r[...])
              + b21[...])
    h2 = _elu(_dotf(h2, w22[...]) + b22[...])
    xs_ref[...] = _batch_norm(h2)                       # x_skip  [B*E, HP]

    # --- edge2node (the 1/N scale is folded into w31 by the wrapper) --------
    for b in range(B):
        nd_ref[pl.ds(b * N, N), :] = _dotf(rrt_ref[...],
                                           xs_ref[pl.ds(b * E, E), :])

    # --- MLP3 on the node slab -----------------------------------------------
    nd_ref[...] = two_layer(nd_ref[...], w31, b31, w32, b32)

    # --- node2edge on h3 (reuses the senders/receivers scratch) -------------
    for b in range(B):
        h3_b = nd_ref[pl.ds(b * N, N), :]
        snd_ref[pl.ds(b * E, E), :] = _dotf(rs_ref[...], h3_b)
        rcv_ref[pl.ds(b * E, E), :] = _dotf(rr_ref[...], h3_b)

    # --- MLP4 (cat([senders, receivers, x_skip]) folded into split weights) -
    h4 = _elu(_dotf(snd_ref[...], w41s[...]) + _dotf(rcv_ref[...], w41r[...])
              + _dotf(xs_ref[...], w41k[...]) + b41[...])
    h4 = _elu(_dotf(h4, w42[...]) + b42[...])
    out_ref[...] = _batch_norm(h4)                      # [B*E, HP] lane-dense


def _fcout_kernel(x_ref, w_ref, b_ref, o_ref):
    o_ref[...] = _dotf(x_ref[...], w_ref[...]) + b_ref[...]


# ------------------------------ wrapper --------------------------------------

def interaction_net_forward(inputs, rel_rec, rel_send, params, n_dig):
    B, N, T, Fin = inputs.shape
    E = rel_rec.shape[0]
    H = params["mlp1_w1"].shape[1]
    HP = _round_up(H, _LANE)           # lane-dense hidden width
    FP = _round_up(Fin, 8)             # pad MLP1's tiny K contraction
    DIG = n_dig * n_dig
    DP = _round_up(DIG, _LANE)         # lane-dense fc_out store (sliced after)
    assert params["fc_out_w"].shape[0] == E * H, "fc_out expects n_iter == E"

    bf16, f32 = jnp.bfloat16, jnp.float32

    def _pad_w(w, rows, cols):
        w = jnp.pad(w, ((0, rows - w.shape[0]), (0, cols - w.shape[1])))
        return w.astype(bf16)

    def _pad_b(bvec, cols):
        return jnp.pad(bvec, ((0, 0), (0, cols - bvec.shape[1]))).astype(f32)

    # Row-flatten time-major so x1 (t=0) / x2 (t=1) are contiguous row slices.
    # MLP1 + its BatchNorm are row-permutation invariant, so this matches the
    # PyTorch (b, n, t) ordering exactly.
    x_rows = jnp.transpose(inputs, (2, 0, 1, 3)).reshape(T * B * N, Fin)
    x_rows = jnp.pad(x_rows, ((0, 0), (0, FP - Fin))).astype(bf16)

    rr = rel_rec.astype(bf16)          # [E, N]
    rs = rel_send.astype(bf16)         # [E, N]
    rrt = rel_rec.T.astype(bf16)       # [N, E]

    w21 = params["mlp2_w1"]            # [2H, H]
    w41 = params["mlp4_w1"]            # [3H, H]
    kernel_args = (
        x_rows, rr, rs, rrt,
        _pad_w(params["mlp1_w1"], FP, HP), _pad_b(params["mlp1_b1"], HP),
        _pad_w(params["mlp1_w2"], HP, HP), _pad_b(params["mlp1_b2"], HP),
        _pad_w(w21[:H], HP, HP), _pad_w(w21[H:], HP, HP),
        _pad_b(params["mlp2_b1"], HP),
        _pad_w(params["mlp2_w2"], HP, HP), _pad_b(params["mlp2_b2"], HP),
        # edge2node divides by N -> fold the scale into mlp3's first weight.
        _pad_w(params["mlp3_w1"] / float(N), HP, HP),
        _pad_b(params["mlp3_b1"], HP),
        _pad_w(params["mlp3_w2"], HP, HP), _pad_b(params["mlp3_b2"], HP),
        _pad_w(w41[:H], HP, HP), _pad_w(w41[H:2 * H], HP, HP),
        _pad_w(w41[2 * H:], HP, HP), _pad_b(params["mlp4_b1"], HP),
        _pad_w(params["mlp4_w2"], HP, HP), _pad_b(params["mlp4_b2"], HP),
    )

    scratch_shapes = [
        pltpu.VMEM((T * B * N, HP), f32),   # MLP1 output (x1 | x2 slabs)
        pltpu.VMEM((B * E, HP), f32),       # senders
        pltpu.VMEM((B * E, HP), f32),       # receivers
        pltpu.VMEM((B * E, HP), f32),       # x_skip
        pltpu.VMEM((B * N, HP), f32),       # node slab (incoming -> h3)
    ]

    def _nbytes(a):
        return a.size * a.dtype.itemsize

    in_bytes = sum(_nbytes(a) for a in kernel_args)
    out_bytes = B * E * HP * 4
    scratch_bytes = (T * B * N + 3 * B * E + B * N) * HP * 4

    def _vmem_limit(nbytes):
        # Explicit limit: 2x the resident footprint + 1 MiB headroom, clamped
        # to v7x's 64 MiB physical VMEM (also lifts v5e's 16 MiB scoped default).
        return int(min(max(2 * nbytes + (1 << 20), 4 << 20), 64 << 20))

    mm = lambda m, k, n: 2 * m * k * n
    flops = (mm(T * B * N, FP, HP) + mm(T * B * N, HP, HP)    # MLP1
             + 4 * B * mm(E, N, HP)                           # node2edge (x2)
             + B * mm(N, E, HP)                               # edge2node
             + 3 * mm(B * E, HP, HP)                          # MLP2
             + 2 * mm(B * N, HP, HP)                          # MLP3
             + 4 * mm(B * E, HP, HP))                         # MLP4
    transcendentals = 2 * HP * (T * B * N + 2 * B * E + B * N) + 4 * HP

    vmem = pl.BlockSpec(memory_space=pltpu.MemorySpace.VMEM)
    edge_feats = pl.pallas_call(
        functools.partial(_inet_kernel, B, N, E),
        out_shape=jax.ShapeDtypeStruct((B * E, HP), f32),
        in_specs=[vmem] * len(kernel_args),
        out_specs=vmem,
        scratch_shapes=scratch_shapes,
        compiler_params=pltpu.CompilerParams(
            vmem_limit_bytes=_vmem_limit(in_bytes + out_bytes + scratch_bytes)),
        cost_estimate=pl.CostEstimate(flops=flops,
                                      transcendentals=transcendentals,
                                      bytes_accessed=in_bytes + out_bytes),
    )(*kernel_args)

    # [B*E, HP] -> [B, E*HP] is a free contiguous reshape (HP is lane-aligned),
    # i.e. the trunk already emits the [B, E*H] layout fc_out wants; E*HP is a
    # multiple of 128 so the fc_out input is fully lane-dense.
    flat = edge_feats.reshape(B, E * HP)

    # fc_out weight: [E*H, DIG] -> zero-pad each per-edge H block to HP and
    # the output to DP, so padded activation columns contribute exactly zero.
    wfc = params["fc_out_w"].reshape(E, H, DIG)
    wfc = jnp.pad(wfc, ((0, 0), (0, HP - H), (0, DP - DIG)))
    wfc = wfc.reshape(E * HP, DP).astype(bf16)
    bfc = jnp.pad(params["fc_out_b"], ((0, 0), (0, DP - DIG))).astype(f32)

    fc_bytes = _nbytes(flat) + _nbytes(wfc) + _nbytes(bfc) + B * DP * 4
    out_pad = pl.pallas_call(
        _fcout_kernel,
        out_shape=jax.ShapeDtypeStruct((B, DP), f32),
        in_specs=[vmem] * 3,
        out_specs=vmem,
        compiler_params=pltpu.CompilerParams(
            vmem_limit_bytes=_vmem_limit(fc_bytes)),
        cost_estimate=pl.CostEstimate(flops=2 * B * E * HP * DP,
                                      transcendentals=0,
                                      bytes_accessed=fc_bytes),
    )(flat, wfc, bfc)

    return out_pad[:, :DIG].reshape(B, n_dig, n_dig)


# --------------------------- parameter init ----------------------------------

def init_params(key, n_in, n_hid, n_iter, n_dig):
    # xavier_normal_ weights + 0.1 biases, as in InteractionNet.init_weights.
    # BatchNorm affine params are gamma=1 / beta=0 (handled inside the kernel).
    def xavier(k, fi, fo):
        std = (2.0 / (fi + fo)) ** 0.5
        return jax.random.normal(k, (fi, fo), jnp.float32) * std

    def bias(fo):
        return jnp.full((1, fo), 0.1, jnp.float32)

    H = n_hid
    ks = jax.random.split(key, 9)
    return {
        "mlp1_w1": xavier(ks[0], n_in, H), "mlp1_b1": bias(H),
        "mlp1_w2": xavier(ks[1], H, H),    "mlp1_b2": bias(H),
        "mlp2_w1": xavier(ks[2], 2 * H, H), "mlp2_b1": bias(H),
        "mlp2_w2": xavier(ks[3], H, H),    "mlp2_b2": bias(H),
        "mlp3_w1": xavier(ks[4], H, H),    "mlp3_b1": bias(H),
        "mlp3_w2": xavier(ks[5], H, H),    "mlp3_b2": bias(H),
        "mlp4_w1": xavier(ks[6], 3 * H, H), "mlp4_b1": bias(H),
        "mlp4_w2": xavier(ks[7], H, H),    "mlp4_b2": bias(H),
        "fc_out_w": xavier(ks[8], n_iter * H, n_dig ** 2),
        "fc_out_b": jnp.full((1, n_dig ** 2), 0.1, jnp.float32),
    }


# --------------------------------- main ---------------------------------------

if __name__ == "__main__":
    key = jax.random.PRNGKey(0)
    B, N, T, n_in = 2, 5, 2, 4          # batch, objects, timesteps (>=2), feats
    n_hid, n_dig = 32, 4
    E = N * (N - 1)                     # fully-connected graph, no self loops
    n_iter = E                          # fc_out expects n_iter * n_hid inputs

    k_in, k_p = jax.random.split(key)
    inputs = jax.random.normal(k_in, (B, N, T, n_in), jnp.float32)

    # NRI-style one-hot relation matrices.
    off_diag = jnp.ones((N, N), jnp.float32) - jnp.eye(N, dtype=jnp.float32)
    recv_idx, send_idx = jnp.nonzero(off_diag, size=E)
    rel_rec = jax.nn.one_hot(recv_idx, N, dtype=jnp.float32)    # [E, N]
    rel_send = jax.nn.one_hot(send_idx, N, dtype=jnp.float32)   # [E, N]

    params = init_params(k_p, n_in, n_hid, n_iter, n_dig)

    out = interaction_net_forward(inputs, rel_rec, rel_send, params, n_dig)
    out = jax.block_until_ready(out)

    assert out.shape == (B, n_dig, n_dig)
    assert bool(jnp.all(jnp.isfinite(out)))
    print("KERNEL_OK")
</pallas_src>

<mosaic_0001>
module attributes {stable_mosaic.version = 11 : i64} {
  func.func @_inet_kernel(%arg0: memref<20x8xbf16, #tpu.memory_space<vmem>>, %arg1: memref<20x5xbf16, #tpu.memory_space<vmem>>, %arg2: memref<20x5xbf16, #tpu.memory_space<vmem>>, %arg3: memref<5x20xbf16, #tpu.memory_space<vmem>>, %arg4: memref<8x128xbf16, #tpu.memory_space<vmem>>, %arg5: memref<1x128xf32, #tpu.memory_space<vmem>>, %arg6: memref<128x128xbf16, #tpu.memory_space<vmem>>, %arg7: memref<1x128xf32, #tpu.memory_space<vmem>>, %arg8: memref<128x128xbf16, #tpu.memory_space<vmem>>, %arg9: memref<128x128xbf16, #tpu.memory_space<vmem>>, %arg10: memref<1x128xf32, #tpu.memory_space<vmem>>, %arg11: memref<128x128xbf16, #tpu.memory_space<vmem>>, %arg12: memref<1x128xf32, #tpu.memory_space<vmem>>, %arg13: memref<128x128xbf16, #tpu.memory_space<vmem>>, %arg14: memref<1x128xf32, #tpu.memory_space<vmem>>, %arg15: memref<128x128xbf16, #tpu.memory_space<vmem>>, %arg16: memref<1x128xf32, #tpu.memory_space<vmem>>, %arg17: memref<128x128xbf16, #tpu.memory_space<vmem>>, %arg18: memref<128x128xbf16, #tpu.memory_space<vmem>>, %arg19: memref<128x128xbf16, #tpu.memory_space<vmem>>, %arg20: memref<1x128xf32, #tpu.memory_space<vmem>>, %arg21: memref<128x128xbf16, #tpu.memory_space<vmem>>, %arg22: memref<1x128xf32, #tpu.memory_space<vmem>>, %arg23: memref<40x128xf32, #tpu.memory_space<vmem>>, %arg24: memref<20x128xf32, #tpu.memory_space<vmem>>, %arg25: memref<40x128xf32, #tpu.memory_space<vmem>>, %arg26: memref<40x128xf32, #tpu.memory_space<vmem>>, %arg27: memref<40x128xf32, #tpu.memory_space<vmem>>, %arg28: memref<10x128xf32, #tpu.memory_space<vmem>>) attributes {dimension_semantics = [], scalar_prefetch = 0 : i64, scratch_operands = 5 : i64, tpu.core_type = #tpu.core_type<tc>} {
    %c0 = arith.constant 0 : index
    %c0_0 = arith.constant 0 : index
    %0 = vector.load %arg0[%c0, %c0_0] : memref<20x8xbf16, #tpu.memory_space<vmem>>, vector<20x8xbf16>
    %c0_1 = arith.constant 0 : index
    %c0_2 = arith.constant 0 : index
    %1 = vector.load %arg4[%c0_1, %c0_2] : memref<8x128xbf16, #tpu.memory_space<vmem>>, vector<8x128xbf16>
    %cst = arith.constant dense<0.000000e+00> : vector<20x128xf32>
    %2 = tpu.matmul %0, %1, %cst {dimension_numbers = #tpu.dot_dimension_numbers<[1], [0], [0], [1], [0, 0, 1, 1], [], []>} : vector<20x8xbf16>, vector<8x128xbf16>, vector<20x128xf32> -> vector<20x128xf32>
    %c0_3 = arith.constant 0 : index
    %c0_4 = arith.constant 0 : index
    %3 = vector.load %arg5[%c0_3, %c0_4] : memref<1x128xf32, #tpu.memory_space<vmem>>, vector<1x128xf32>
    %4 = vector.broadcast %3 : vector<1x128xf32> to vector<20x128xf32>
    %5 = arith.addf %2, %4 : vector<20x128xf32>
    %cst_5 = arith.constant 0.000000e+00 : f32
    %6 = vector.broadcast %cst_5 : f32 to vector<20x128xf32>
    %7 = arith.cmpf ogt, %5, %6 : vector<20x128xf32>
    %cst_6 = arith.constant 0.000000e+00 : f32
    %8 = vector.broadcast %cst_6 : f32 to vector<20x128xf32>
    %9 = arith.minimumf %5, %8 : vector<20x128xf32>
    %10 = math.exp %9 : vector<20x128xf32>
    %cst_7 = arith.constant 1.000000e+00 : f32
    %11 = vector.broadcast %cst_7 : f32 to vector<20x128xf32>
    %12 = arith.subf %10, %11 : vector<20x128xf32>
    %13 = arith.select %7, %5, %12 : vector<20x128xi1>, vector<20x128xf32>
    %c0_8 = arith.constant 0 : index
    %c0_9 = arith.constant 0 : index
    %14 = vector.load %arg6[%c0_8, %c0_9] : memref<128x128xbf16, #tpu.memory_space<vmem>>, vector<128x128xbf16>
    %15 = arith.truncf %13 : vector<20x128xf32> to vector<20x128xbf16>
    %cst_10 = arith.constant dense<0.000000e+00> : vector<20x128xf32>
    %16 = tpu.matmul %15, %14, %cst_10 {dimension_numbers = #tpu.dot_dimension_numbers<[1], [0], [0], [1], [0, 0, 1, 1], [], []>} : vector<20x128xbf16>, vector<128x128xbf16>, vector<20x128xf32> -> vector<20x128xf32>
    %c0_11 = arith.constant 0 : index
    %c0_12 = arith.constant 0 : index
    %17 = vector.load %arg7[%c0_11, %c0_12] : memref<1x128xf32, #tpu.memory_space<vmem>>, vector<1x128xf32>
    %18 = vector.broadcast %17 : vector<1x128xf32> to vector<20x128xf32>
    %19 = arith.addf %16, %18 : vector<20x128xf32>
    %cst_13 = arith.constant 0.000000e+00 : f32
    %20 = vector.broadcast %cst_13 : f32 to vector<20x128xf32>
    %21 = arith.cmpf ogt, %19, %20 : vector<20x128xf32>
    %cst_14 = arith.constant 0.000000e+00 : f32
    %22 = vector.broadcast %cst_14 : f32 to vector<20x128xf32>
    %23 = arith.minimumf %19, %22 : vector<20x128xf32>
    %24 = math.exp %23 : vector<20x128xf32>
    %cst_15 = arith.constant 1.000000e+00 : f32
    %25 = vector.broadcast %cst_15 : f32 to vector<20x128xf32>
    %26 = arith.subf %24, %25 : vector<20x128xf32>
    %27 = arith.select %21, %19, %26 : vector<20x128xi1>, vector<20x128xf32>
    %cst_16 = arith.constant dense<0.000000e+00> : vector<128xf32>
    %28 = vector.multi_reduction <add>, %27, %cst_16 [0] : vector<20x128xf32> to vector<128xf32>
    %29 = vector.shape_cast %28 : vector<128xf32> to vector<1x128xf32>
    %cst_17 = arith.constant 2.000000e+01 : f32
    %30 = vector.broadcast %cst_17 : f32 to vector<1x128xf32>
    %31 = arith.divf %29, %30 : vector<1x128xf32>
    %32 = arith.mulf %27, %27 : vector<20x128xf32>
    %cst_18 = arith.constant dense<0.000000e+00> : vector<128xf32>
    %33 = vector.multi_reduction <add>, %32, %cst_18 [0] : vector<20x128xf32> to vector<128xf32>
    %34 = vector.shape_cast %33 : vector<128xf32> to vector<1x128xf32>
    %cst_19 = arith.constant 2.000000e+01 : f32
    %35 = vector.broadcast %cst_19 : f32 to vector<1x128xf32>
    %36 = arith.divf %34, %35 : vector<1x128xf32>
    %37 = arith.mulf %31, %31 : vector<1x128xf32>
    %38 = arith.subf %36, %37 : vector<1x128xf32>
    %cst_20 = arith.constant 0.000000e+00 : f32
    %39 = vector.broadcast %cst_20 : f32 to vector<1x128xf32>
    %40 = arith.maximumf %38, %39 : vector<1x128xf32>
    %41 = vector.broadcast %31 : vector<1x128xf32> to vector<20x128xf32>
    %42 = arith.subf %27, %41 : vector<20x128xf32>
    %cst_21 = arith.constant 9.99999974E-6 : f32
    %43 = vector.broadcast %cst_21 : f32 to vector<1x128xf32>
    %44 = arith.addf %40, %43 : vector<1x128xf32>
    %45 = math.rsqrt %44 : vector<1x128xf32>
    %46 = vector.broadcast %45 : vector<1x128xf32> to vector<20x128xf32>
    %47 = arith.mulf %42, %46 : vector<20x128xf32>
    %c0_22 = arith.constant 0 : index
    %c0_23 = arith.constant 0 : index
    %48 = vector.load %arg24[%c0_22, %c0_23] : memref<20x128xf32, #tpu.memory_space<vmem>>, vector<20x128xf32>
    tpu.vector_store %arg24[%c0_22, %c0_23], %47 {strides = array<i32>} : memref<20x128xf32, #tpu.memory_space<vmem>>, vector<20x128xf32>,
    %c0_24 = arith.constant 0 : index
    %c0_25 = arith.constant 0 : index
    %49 = vector.load %arg24[%c0_24, %c0_25] : memref<20x128xf32, #tpu.memory_space<vmem>>, vector<5x128xf32>
    %c10 = arith.constant 10 : index
    %c0_26 = arith.constant 0 : index
    %50 = vector.load %arg24[%c10, %c0_26] : memref<20x128xf32, #tpu.memory_space<vmem>>, vector<5x128xf32>
    %c0_27 = arith.constant 0 : index
    %c0_28 = arith.constant 0 : index
    %51 = vector.load %arg2[%c0_27, %c0_28] : memref<20x5xbf16, #tpu.memory_space<vmem>>, vector<20x5xbf16>
    %52 = arith.truncf %49 : vector<5x128xf32> to vector<5x128xbf16>
    %cst_29 = arith.constant dense<0.000000e+00> : vector<20x128xf32>
    %53 = tpu.matmul %51, %52, %cst_29 {dimension_numbers = #tpu.dot_dimension_numbers<[1], [0], [0], [1], [0, 0, 1, 1], [], []>} : vector<20x5xbf16>, vector<5x128xbf16>, vector<20x128xf32> -> vector<20x128xf32>
    %c0_30 = arith.constant 0 : index
    %c0_31 = arith.constant 0 : index
    %54 = vector.load %arg25[%c0_30, %c0_31] : memref<40x128xf32, #tpu.memory_space<vmem>>, vector<20x128xf32>
    tpu.vector_store %arg25[%c0_30, %c0_31], %53 {strides = array<i32>} : memref<40x128xf32, #tpu.memory_space<vmem>>, vector<20x128xf32>,
    %c0_32 = arith.constant 0 : index
    %c0_33 = arith.constant 0 : index
    %55 = vector.load %arg1[%c0_32, %c0_33] : memref<20x5xbf16, #tpu.memory_space<vmem>>, vector<20x5xbf16>
    %56 = arith.truncf %50 : vector<5x128xf32> to vector<5x128xbf16>
    %cst_34 = arith.constant dense<0.000000e+00> : vector<20x128xf32>
    %57 = tpu.matmul %55, %56, %cst_34 {dimension_numbers = #tpu.dot_dimension_numbers<[1], [0], [0], [1], [0, 0, 1, 1], [], []>} : vector<20x5xbf16>, vector<5x128xbf16>, vector<20x128xf32> -> vector<20x128xf32>
    %c0_35 = arith.constant 0 : index
    %c0_36 = arith.constant 0 : index
    %58 = vector.load %arg26[%c0_35, %c0_36] : memref<40x128xf32, #tpu.memory_space<vmem>>, vector<20x128xf32>
    tpu.vector_store %arg26[%c0_35, %c0_36], %57 {strides = array<i32>} : memref<40x128xf32, #tpu.memory_space<vmem>>, vector<20x128xf32>,
    %c5 = arith.constant 5 : index
    %c0_37 = arith.constant 0 : index
    %59 = vector.load %arg24[%c5, %c0_37] : memref<20x128xf32, #tpu.memory_space<vmem>>, vector<5x128xf32>
    %c15 = arith.constant 15 : index
    %c0_38 = arith.constant 0 : index
    %60 = vector.load %arg24[%c15, %c0_38] : memref<20x128xf32, #tpu.memory_space<vmem>>, vector<5x128xf32>
    %c0_39 = arith.constant 0 : index
    %c0_40 = arith.constant 0 : index
    %61 = vector.load %arg2[%c0_39, %c0_40] : memref<20x5xbf16, #tpu.memory_space<vmem>>, vector<20x5xbf16>
    %62 = arith.truncf %59 : vector<5x128xf32> to vector<5x128xbf16>
    %cst_41 = arith.constant dense<0.000000e+00> : vector<20x128xf32>
    %63 = tpu.matmul %61, %62, %cst_41 {dimension_numbers = #tpu.dot_dimension_numbers<[1], [0], [0], [1], [0, 0, 1, 1], [], []>} : vector<20x5xbf16>, vector<5x128xbf16>, vector<20x128xf32> -> vector<20x128xf32>
    %c20 = arith.constant 20 : index
    %c0_42 = arith.constant 0 : index
    %64 = vector.load %arg25[%c20, %c0_42] : memref<40x128xf32, #tpu.memory_space<vmem>>, vector<20x128xf32>
    tpu.vector_store %arg25[%c20, %c0_42], %63 {strides = array<i32>} : memref<40x128xf32, #tpu.memory_space<vmem>>, vector<20x128xf32>,
    %c0_43 = arith.constant 0 : index
    %c0_44 = arith.constant 0 : index
    %65 = vector.load %arg1[%c0_43, %c0_44] : memref<20x5xbf16, #tpu.memory_space<vmem>>, vector<20x5xbf16>
    %66 = arith.truncf %60 : vector<5x128xf32> to vector<5x128xbf16>
    %cst_45 = arith.constant dense<0.000000e+00> : vector<20x128xf32>
    %67 = tpu.matmul %65, %66, %cst_45 {dimension_numbers = #tpu.dot_dimension_numbers<[1], [0], [0], [1], [0, 0, 1, 1], [], []>} : vector<20x5xbf16>, vector<5x128xbf16>, vector<20x128xf32> -> vector<20x128xf32>
    %c20_46 = arith.constant 20 : index
    %c0_47 = arith.constant 0 : index
    %68 = vector.load %arg26[%c20_46, %c0_47] : memref<40x128xf32, #tpu.memory_space<vmem>>, vector<20x128xf32>
    tpu.vector_store %arg26[%c20_46, %c0_47], %67 {strides = array<i32>} : memref<40x128xf32, #tpu.memory_space<vmem>>, vector<20x128xf32>,
    %c0_48 = arith.constant 0 : index
    %c0_49 = arith.constant 0 : index
    %69 = vector.load %arg25[%c0_48, %c0_49] : memref<40x128xf32, #tpu.memory_space<vmem>>, vector<40x128xf32>
    %c0_50 = arith.constant 0 : index
    %c0_51 = arith.constant 0 : index
    %70 = vector.load %arg8[%c0_50, %c0_51] : memref<128x128xbf16, #tpu.memory_space<vmem>>, vector<128x128xbf16>
    %71 = arith.truncf %69 : vector<40x128xf32> to vector<40x128xbf16>
    %cst_52 = arith.constant dense<0.000000e+00> : vector<40x128xf32>
    %72 = tpu.matmul %71, %70, %cst_52 {dimension_numbers = #tpu.dot_dimension_numbers<[1], [0], [0], [1], [0, 0, 1, 1], [], []>} : vector<40x128xbf16>, vector<128x128xbf16>, vector<40x128xf32> -> vector<40x128xf32>
    %c0_53 = arith.constant 0 : index
    %c0_54 = arith.constant 0 : index
    %73 = vector.load %arg26[%c0_53, %c0_54] : memref<40x128xf32, #tpu.memory_space<vmem>>, vector<40x128xf32>
    %c0_55 = arith.constant 0 : index
    %c0_56 = arith.constant 0 : index
    %74 = vector.load %arg9[%c0_55, %c0_56] : memref<128x128xbf16, #tpu.memory_space<vmem>>, vector<128x128xbf16>
    %75 = arith.truncf %73 : vector<40x128xf32> to vector<40x128xbf16>
    %cst_57 = arith.constant dense<0.000000e+00> : vector<40x128xf32>
    %76 = tpu.matmul %75, %74, %cst_57 {dimension_numbers = #tpu.dot_dimension_numbers<[1], [0], [0], [1], [0, 0, 1, 1], [], []>} : vector<40x128xbf16>, vector<128x128xbf16>, vector<40x128xf32> -> vector<40x128xf32>
    %77 = arith.addf %72, %76 : vector<40x128xf32>
    %c0_58 = arith.constant 0 : index
    %c0_59 = arith.constant 0 : index
    %78 = vector.load %arg10[%c0_58, %c0_59] : memref<1x128xf32, #tpu.memory_space<vmem>>, vector<1x128xf32>
    %79 = vector.broadcast %78 : vector<1x128xf32> to vector<40x128xf32>
    %80 = arith.addf %77, %79 : vector<40x128xf32>
    %cst_60 = arith.constant 0.000000e+00 : f32
    %81 = vector.broadcast %cst_60 : f32 to vector<40x128xf32>
    %82 = arith.cmpf ogt, %80, %81 : vector<40x128xf32>
    %cst_61 = arith.constant 0.000000e+00 : f32
    %83 = vector.broadcast %cst_61 : f32 to vector<40x128xf32>
    %84 = arith.minimumf %80, %83 : vector<40x128xf32>
    %85 = math.exp %84 : vector<40x128xf32>
    %cst_62 = arith.constant 1.000000e+00 : f32
    %86 = vector.broadcast %cst_62 : f32 to vector<40x128xf32>
    %87 = arith.subf %85, %86 : vector<40x128xf32>
    %88 = arith.select %82, %80, %87 : vector<40x128xi1>, vector<40x128xf32>
    %c0_63 = arith.constant 0 : index
    %c0_64 = arith.constant 0 : index
    %89 = vector.load %arg11[%c0_63, %c0_64] : memref<128x128xbf16, #tpu.memory_space<vmem>>, vector<128x128xbf16>
    %90 = arith.truncf %88 : vector<40x128xf32> to vector<40x128xbf16>
    %cst_65 = arith.constant dense<0.000000e+00> : vector<40x128xf32>
    %91 = tpu.matmul %90, %89, %cst_65 {dimension_numbers = #tpu.dot_dimension_numbers<[1], [0], [0], [1], [0, 0, 1, 1], [], []>} : vector<40x128xbf16>, vector<128x128xbf16>, vector<40x128xf32> -> vector<40x128xf32>
    %c0_66 = arith.constant 0 : index
    %c0_67 = arith.constant 0 : index
    %92 = vector.load %arg12[%c0_66, %c0_67] : memref<1x128xf32, #tpu.memory_space<vmem>>, vector<1x128xf32>
    %93 = vector.broadcast %92 : vector<1x128xf32> to vector<40x128xf32>
    %94 = arith.addf %91, %93 : vector<40x128xf32>
    %cst_68 = arith.constant 0.000000e+00 : f32
    %95 = vector.broadcast %cst_68 : f32 to vector<40x128xf32>
    %96 = arith.cmpf ogt, %94, %95 : vector<40x128xf32>
    %cst_69 = arith.constant 0.000000e+00 : f32
    %97 = vector.broadcast %cst_69 : f32 to vector<40x128xf32>
    %98 = arith.minimumf %94, %97 : vector<40x128xf32>
    %99 = math.exp %98 : vector<40x128xf32>
    %cst_70 = arith.constant 1.000000e+00 : f32
    %100 = vector.broadcast %cst_70 : f32 to vector<40x128xf32>
    %101 = arith.subf %99, %100 : vector<40x128xf32>
    %102 = arith.select %96, %94, %101 : vector<40x128xi1>, vector<40x128xf32>
    %cst_71 = arith.constant dense<0.000000e+00> : vector<128xf32>
    %103 = vector.multi_reduction <add>, %102, %cst_71 [0] : vector<40x128xf32> to vector<128xf32>
    %104 = vector.shape_cast %103 : vector<128xf32> to vector<1x128xf32>
    %cst_72 = arith.constant 4.000000e+01 : f32
    %105 = vector.broadcast %cst_72 : f32 to vector<1x128xf32>
    %106 = arith.divf %104, %105 : vector<1x128xf32>
    %107 = arith.mulf %102, %102 : vector<40x128xf32>
    %cst_73 = arith.constant dense<0.000000e+00> : vector<128xf32>
    %108 = vector.multi_reduction <add>, %107, %cst_73 [0] : vector<40x128xf32> to vector<128xf32>
    %109 = vector.shape_cast %108 : vector<128xf32> to vector<1x128xf32>
    %cst_74 = arith.constant 4.000000e+01 : f32
    %110 = vector.broadcast %cst_74 : f32 to vector<1x128xf32>
    %111 = arith.divf %109, %110 : vector<1x128xf32>
    %112 = arith.mulf %106, %106 : vector<1x128xf32>
    %113 = arith.subf %111, %112 : vector<1x128xf32>
    %cst_75 = arith.constant 0.000000e+00 : f32
    %114 = vector.broadcast %cst_75 : f32 to vector<1x128xf32>
    %115 = arith.maximumf %113, %114 : vector<1x128xf32>
    %116 = vector.broadcast %106 : vector<1x128xf32> to vector<40x128xf32>
    %117 = arith.subf %102, %116 : vector<40x128xf32>
    %cst_76 = arith.constant 9.99999974E-6 : f32
    %118 = vector.broadcast %cst_76 : f32 to vector<1x128xf32>
    %119 = arith.addf %115, %118 : vector<1x128xf32>
    %120 = math.rsqrt %119 : vector<1x128xf32>
    %121 = vector.broadcast %120 : vector<1x128xf32> to vector<40x128xf32>
    %122 = arith.mulf %117, %121 : vector<40x128xf32>
    %c0_77 = arith.constant 0 : index
    %c0_78 = arith.constant 0 : index
    %123 = vector.load %arg27[%c0_77, %c0_78] : memref<40x128xf32, #tpu.memory_space<vmem>>, vector<40x128xf32>
    tpu.vector_store %arg27[%c0_77, %c0_78], %122 {strides = array<i32>} : memref<40x128xf32, #tpu.memory_space<vmem>>, vector<40x128xf32>,
    %c0_79 = arith.constant 0 : index
    %c0_80 = arith.constant 0 : index
    %124 = vector.load %arg3[%c0_79, %c0_80] : memref<5x20xbf16, #tpu.memory_space<vmem>>, vector<5x20xbf16>
    %c0_81 = arith.constant 0 : index
    %c0_82 = arith.constant 0 : index
    %125 = vector.load %arg27[%c0_81, %c0_82] : memref<40x128xf32, #tpu.memory_space<vmem>>, vector<20x128xf32>
    %126 = arith.truncf %125 : vector<20x128xf32> to vector<20x128xbf16>
    %cst_83 = arith.constant dense<0.000000e+00> : vector<5x128xf32>
    %127 = tpu.matmul %124, %126, %cst_83 {dimension_numbers = #tpu.dot_dimension_numbers<[1], [0], [0], [1], [0, 0, 1, 1], [], []>} : vector<5x20xbf16>, vector<20x128xbf16>, vector<5x128xf32> -> vector<5x128xf32>
    %c0_84 = arith.constant 0 : index
    %c0_85 = arith.constant 0 : index
    %128 = vector.load %arg28[%c0_84, %c0_85] : memref<10x128xf32, #tpu.memory_space<vmem>>, vector<5x128xf32>
    tpu.vector_store %arg28[%c0_84, %c0_85], %127 {strides = array<i32>} : memref<10x128xf32, #tpu.memory_space<vmem>>, vector<5x128xf32>,
    %c0_86 = arith.constant 0 : index
    %c0_87 = arith.constant 0 : index
    %129 = vector.load %arg3[%c0_86, %c0_87] : memref<5x20xbf16, #tpu.memory_space<vmem>>, vector<5x20xbf16>
    %c20_88 = arith.constant 20 : index
    %c0_89 = arith.constant 0 : index
    %130 = vector.load %arg27[%c20_88, %c0_89] : memref<40x128xf32, #tpu.memory_space<vmem>>, vector<20x128xf32>
    %131 = arith.truncf %130 : vector<20x128xf32> to vector<20x128xbf16>
    %cst_90 = arith.constant dense<0.000000e+00> : vector<5x128xf32>
    %132 = tpu.matmul %129, %131, %cst_90 {dimension_numbers = #tpu.dot_dimension_numbers<[1], [0], [0], [1], [0, 0, 1, 1], [], []>} : vector<5x20xbf16>, vector<20x128xbf16>, vector<5x128xf32> -> vector<5x128xf32>
    %c5_91 = arith.constant 5 : index
    %c0_92 = arith.constant 0 : index
    %133 = vector.load %arg28[%c5_91, %c0_92] : memref<10x128xf32, #tpu.memory_space<vmem>>, vector<5x128xf32>
    tpu.vector_store %arg28[%c5_91, %c0_92], %132 {strides = array<i32>} : memref<10x128xf32, #tpu.memory_space<vmem>>, vector<5x128xf32>,
    %c0_93 = arith.constant 0 : index
    %c0_94 = arith.constant 0 : index
    %134 = vector.load %arg28[%c0_93, %c0_94] : memref<10x128xf32, #tpu.memory_space<vmem>>, vector<10x128xf32>
    %c0_95 = arith.constant 0 : index
    %c0_96 = arith.constant 0 : index
    %135 = vector.load %arg13[%c0_95, %c0_96] : memref<128x128xbf16, #tpu.memory_space<vmem>>, vector<128x128xbf16>
    %136 = arith.truncf %134 : vector<10x128xf32> to vector<10x128xbf16>
    %cst_97 = arith.constant dense<0.000000e+00> : vector<10x128xf32>
    %137 = tpu.matmul %136, %135, %cst_97 {dimension_numbers = #tpu.dot_dimension_numbers<[1], [0], [0], [1], [0, 0, 1, 1], [], []>} : vector<10x128xbf16>, vector<128x128xbf16>, vector<10x128xf32> -> vector<10x128xf32>
    %c0_98 = arith.constant 0 : index
    %c0_99 = arith.constant 0 : index
    %138 = vector.load %arg14[%c0_98, %c0_99] : memref<1x128xf32, #tpu.memory_space<vmem>>, vector<1x128xf32>
    %139 = vector.broadcast %138 : vector<1x128xf32> to vector<10x128xf32>
    %140 = arith.addf %137, %139 : vector<10x128xf32>
    %cst_100 = arith.constant 0.000000e+00 : f32
    %141 = vector.broadcast %cst_100 : f32 to vector<10x128xf32>
    %142 = arith.cmpf ogt, %140, %141 : vector<10x128xf32>
    %cst_101 = arith.constant 0.000000e+00 : f32
    %143 = vector.broadcast %cst_101 : f32 to vector<10x128xf32>
    %144 = arith.minimumf %140, %143 : vector<10x128xf32>
    %145 = math.exp %144 : vector<10x128xf32>
    %cst_102 = arith.constant 1.000000e+00 : f32
    %146 = vector.broadcast %cst_102 : f32 to vector<10x128xf32>
    %147 = arith.subf %145, %146 : vector<10x128xf32>
    %148 = arith.select %142, %140, %147 : vector<10x128xi1>, vector<10x128xf32>
    %c0_103 = arith.constant 0 : index
    %c0_104 = arith.constant 0 : index
    %149 = vector.load %arg15[%c0_103, %c0_104] : memref<128x128xbf16, #tpu.memory_space<vmem>>, vector<128x128xbf16>
    %150 = arith.truncf %148 : vector<10x128xf32> to vector<10x128xbf16>
    %cst_105 = arith.constant dense<0.000000e+00> : vector<10x128xf32>
    %151 = tpu.matmul %150, %149, %cst_105 {dimension_numbers = #tpu.dot_dimension_numbers<[1], [0], [0], [1], [0, 0, 1, 1], [], []>} : vector<10x128xbf16>, vector<128x128xbf16>, vector<10x128xf32> -> vector<10x128xf32>
    %c0_106 = arith.constant 0 : index
    %c0_107 = arith.constant 0 : index
    %152 = vector.load %arg16[%c0_106, %c0_107] : memref<1x128xf32, #tpu.memory_space<vmem>>, vector<1x128xf32>
    %153 = vector.broadcast %152 : vector<1x128xf32> to vector<10x128xf32>
    %154 = arith.addf %151, %153 : vector<10x128xf32>
    %cst_108 = arith.constant 0.000000e+00 : f32
    %155 = vector.broadcast %cst_108 : f32 to vector<10x128xf32>
    %156 = arith.cmpf ogt, %154, %155 : vector<10x128xf32>
    %cst_109 = arith.constant 0.000000e+00 : f32
    %157 = vector.broadcast %cst_109 : f32 to vector<10x128xf32>
    %158 = arith.minimumf %154, %157 : vector<10x128xf32>
    %159 = math.exp %158 : vector<10x128xf32>
    %cst_110 = arith.constant 1.000000e+00 : f32
    %160 = vector.broadcast %cst_110 : f32 to vector<10x128xf32>
    %161 = arith.subf %159, %160 : vector<10x128xf32>
    %162 = arith.select %156, %154, %161 : vector<10x128xi1>, vector<10x128xf32>
    %cst_111 = arith.constant dense<0.000000e+00> : vector<128xf32>
    %163 = vector.multi_reduction <add>, %162, %cst_111 [0] : vector<10x128xf32> to vector<128xf32>
    %164 = vector.shape_cast %163 : vector<128xf32> to vector<1x128xf32>
    %cst_112 = arith.constant 1.000000e+01 : f32
    %165 = vector.broadcast %cst_112 : f32 to vector<1x128xf32>
    %166 = arith.divf %164, %165 : vector<1x128xf32>
    %167 = arith.mulf %162, %162 : vector<10x128xf32>
    %cst_113 = arith.constant dense<0.000000e+00> : vector<128xf32>
    %168 = vector.multi_reduction <add>, %167, %cst_113 [0] : vector<10x128xf32> to vector<128xf32>
    %169 = vector.shape_cast %168 : vector<128xf32> to vector<1x128xf32>
    %cst_114 = arith.constant 1.000000e+01 : f32
    %170 = vector.broadcast %cst_114 : f32 to vector<1x128xf32>
    %171 = arith.divf %169, %170 : vector<1x128xf32>
    %172 = arith.mulf %166, %166 : vector<1x128xf32>
    %173 = arith.subf %171, %172 : vector<1x128xf32>
    %cst_115 = arith.constant 0.000000e+00 : f32
    %174 = vector.broadcast %cst_115 : f32 to vector<1x128xf32>
    %175 = arith.maximumf %173, %174 : vector<1x128xf32>
    %176 = vector.broadcast %166 : vector<1x128xf32> to vector<10x128xf32>
    %177 = arith.subf %162, %176 : vector<10x128xf32>
    %cst_116 = arith.constant 9.99999974E-6 : f32
    %178 = vector.broadcast %cst_116 : f32 to vector<1x128xf32>
    %179 = arith.addf %175, %178 : vector<1x128xf32>
    %180 = math.rsqrt %179 : vector<1x128xf32>
    %181 = vector.broadcast %180 : vector<1x128xf32> to vector<10x128xf32>
    %182 = arith.mulf %177, %181 : vector<10x128xf32>
    %c0_117 = arith.constant 0 : index
    %c0_118 = arith.constant 0 : index
    %183 = vector.load %arg28[%c0_117, %c0_118] : memref<10x128xf32, #tpu.memory_space<vmem>>, vector<10x128xf32>
    tpu.vector_store %arg28[%c0_117, %c0_118], %182 {strides = array<i32>} : memref<10x128xf32, #tpu.memory_space<vmem>>, vector<10x128xf32>,
    %c0_119 = arith.constant 0 : index
    %c0_120 = arith.constant 0 : index
    %184 = vector.load %arg28[%c0_119, %c0_120] : memref<10x128xf32, #tpu.memory_space<vmem>>, vector<5x128xf32>
    %c0_121 = arith.constant 0 : index
    %c0_122 = arith.constant 0 : index
    %185 = vector.load %arg2[%c0_121, %c0_122] : memref<20x5xbf16, #tpu.memory_space<vmem>>, vector<20x5xbf16>
    %186 = arith.truncf %184 : vector<5x128xf32> to vector<5x128xbf16>
    %cst_123 = arith.constant dense<0.000000e+00> : vector<20x128xf32>
    %187 = tpu.matmul %185, %186, %cst_123 {dimension_numbers = #tpu.dot_dimension_numbers<[1], [0], [0], [1], [0, 0, 1, 1], [], []>} : vector<20x5xbf16>, vector<5x128xbf16>, vector<20x128xf32> -> vector<20x128xf32>
    %c0_124 = arith.constant 0 : index
    %c0_125 = arith.constant 0 : index
    %188 = vector.load %arg25[%c0_124, %c0_125] : memref<40x128xf32, #tpu.memory_space<vmem>>, vector<20x128xf32>
    tpu.vector_store %arg25[%c0_124, %c0_125], %187 {strides = array<i32>} : memref<40x128xf32, #tpu.memory_space<vmem>>, vector<20x128xf32>,
    %c0_126 = arith.constant 0 : index
    %c0_127 = arith.constant 0 : index
    %189 = vector.load %arg1[%c0_126, %c0_127] : memref<20x5xbf16, #tpu.memory_space<vmem>>, vector<20x5xbf16>
    %190 = arith.truncf %184 : vector<5x128xf32> to vector<5x128xbf16>
    %cst_128 = arith.constant dense<0.000000e+00> : vector<20x128xf32>
    %191 = tpu.matmul %189, %190, %cst_128 {dimension_numbers = #tpu.dot_dimension_numbers<[1], [0], [0], [1], [0, 0, 1, 1], [], []>} : vector<20x5xbf16>, vector<5x128xbf16>, vector<20x128xf32> -> vector<20x128xf32>
    %c0_129 = arith.constant 0 : index
    %c0_130 = arith.constant 0 : index
    %192 = vector.load %arg26[%c0_129, %c0_130] : memref<40x128xf32, #tpu.memory_space<vmem>>, vector<20x128xf32>
    tpu.vector_store %arg26[%c0_129, %c0_130], %191 {strides = array<i32>} : memref<40x128xf32, #tpu.memory_space<vmem>>, vector<20x128xf32>,
    %c5_131 = arith.constant 5 : index
    %c0_132 = arith.constant 0 : index
    %193 = vector.load %arg28[%c5_131, %c0_132] : memref<10x128xf32, #tpu.memory_space<vmem>>, vector<5x128xf32>
    %c0_133 = arith.constant 0 : index
    %c0_134 = arith.constant 0 : index
    %194 = vector.load %arg2[%c0_133, %c0_134] : memref<20x5xbf16, #tpu.memory_space<vmem>>, vector<20x5xbf16>
    %195 = arith.truncf %193 : vector<5x128xf32> to vector<5x128xbf16>
    %cst_135 = arith.constant dense<0.000000e+00> : vector<20x128xf32>
    %196 = tpu.matmul %194, %195, %cst_135 {dimension_numbers = #tpu.dot_dimension_numbers<[1], [0], [0], [1], [0, 0, 1, 1], [], []>} : vector<20x5xbf16>, vector<5x128xbf16>, vector<20x128xf32> -> vector<20x128xf32>
    %c20_136 = arith.constant 20 : index
    %c0_137 = arith.constant 0 : index
    %197 = vector.load %arg25[%c20_136, %c0_137] : memref<40x128xf32, #tpu.memory_space<vmem>>, vector<20x128xf32>
    tpu.vector_store %arg25[%c20_136, %c0_137], %196 {strides = array<i32>} : memref<40x128xf32, #tpu.memory_space<vmem>>, vector<20x128xf32>,
    %c0_138 = arith.constant 0 : index
    %c0_139 = arith.constant 0 : index
    %198 = vector.load %arg1[%c0_138, %c0_139] : memref<20x5xbf16, #tpu.memory_space<vmem>>, vector<20x5xbf16>
    %199 = arith.truncf %193 : vector<5x128xf32> to vector<5x128xbf16>
    %cst_140 = arith.constant dense<0.000000e+00> : vector<20x128xf32>
    %200 = tpu.matmul %198, %199, %cst_140 {dimension_numbers = #tpu.dot_dimension_numbers<[1], [0], [0], [1], [0, 0, 1, 1], [], []>} : vector<20x5xbf16>, vector<5x128xbf16>, vector<20x128xf32> -> vector<20x128xf32>
    %c20_141 = arith.constant 20 : index
    %c0_142 = arith.constant 0 : index
    %201 = vector.load %arg26[%c20_141, %c0_142] : memref<40x128xf32, #tpu.memory_space<vmem>>, vector<20x128xf32>
    tpu.vector_store %arg26[%c20_141, %c0_142], %200 {strides = array<i32>} : memref<40x128xf32, #tpu.memory_space<vmem>>, vector<20x128xf32>,
    %c0_143 = arith.constant 0 : index
    %c0_144 = arith.constant 0 : index
    %202 = vector.load %arg25[%c0_143, %c0_144] : memref<40x128xf32, #tpu.memory_space<vmem>>, vector<40x128xf32>
    %c0_145 = arith.constant 0 : index
    %c0_146 = arith.constant 0 : index
    %203 = vector.load %arg17[%c0_145, %c0_146] : memref<128x128xbf16, #tpu.memory_space<vmem>>, vector<128x128xbf16>
    %204 = arith.truncf %202 : vector<40x128xf32> to vector<40x128xbf16>
    %cst_147 = arith.constant dense<0.000000e+00> : vector<40x128xf32>
    %205 = tpu.matmul %204, %203, %cst_147 {dimension_numbers = #tpu.dot_dimension_numbers<[1], [0], [0], [1], [0, 0, 1, 1], [], []>} : vector<40x128xbf16>, vector<128x128xbf16>, vector<40x128xf32> -> vector<40x128xf32>
    %c0_148 = arith.constant 0 : index
    %c0_149 = arith.constant 0 : index
    %206 = vector.load %arg26[%c0_148, %c0_149] : memref<40x128xf32, #tpu.memory_space<vmem>>, vector<40x128xf32>
    %c0_150 = arith.constant 0 : index
    %c0_151 = arith.constant 0 : index
    %207 = vector.load %arg18[%c0_150, %c0_151] : memref<128x128xbf16, #tpu.memory_space<vmem>>, vector<128x128xbf16>
    %208 = arith.truncf %206 : vector<40x128xf32> to vector<40x128xbf16>
    %cst_152 = arith.constant dense<0.000000e+00> : vector<40x128xf32>
    %209 = tpu.matmul %208, %207, %cst_152 {dimension_numbers = #tpu.dot_dimension_numbers<[1], [0], [0], [1], [0, 0, 1, 1], [], []>} : vector<40x128xbf16>, vector<128x128xbf16>, vector<40x128xf32> -> vector<40x128xf32>
    %210 = arith.addf %205, %209 : vector<40x128xf32>
    %c0_153 = arith.constant 0 : index
    %c0_154 = arith.constant 0 : index
    %211 = vector.load %arg27[%c0_153, %c0_154] : memref<40x128xf32, #tpu.memory_space<vmem>>, vector<40x128xf32>
    %c0_155 = arith.constant 0 : index
    %c0_156 = arith.constant 0 : index
    %212 = vector.load %arg19[%c0_155, %c0_156] : memref<128x128xbf16, #tpu.memory_space<vmem>>, vector<128x128xbf16>
    %213 = arith.truncf %211 : vector<40x128xf32> to vector<40x128xbf16>
    %cst_157 = arith.constant dense<0.000000e+00> : vector<40x128xf32>
    %214 = tpu.matmul %213, %212, %cst_157 {dimension_numbers = #tpu.dot_dimension_numbers<[1], [0], [0], [1], [0, 0, 1, 1], [], []>} : vector<40x128xbf16>, vector<128x128xbf16>, vector<40x128xf32> -> vector<40x128xf32>
    %215 = arith.addf %210, %214 : vector<40x128xf32>
    %c0_158 = arith.constant 0 : index
    %c0_159 = arith.constant 0 : index
    %216 = vector.load %arg20[%c0_158, %c0_159] : memref<1x128xf32, #tpu.memory_space<vmem>>, vector<1x128xf32>
    %217 = vector.broadcast %216 : vector<1x128xf32> to vector<40x128xf32>
    %218 = arith.addf %215, %217 : vector<40x128xf32>
    %cst_160 = arith.constant 0.000000e+00 : f32
    %219 = vector.broadcast %cst_160 : f32 to vector<40x128xf32>
    %220 = arith.cmpf ogt, %218, %219 : vector<40x128xf32>
    %cst_161 = arith.constant 0.000000e+00 : f32
    %221 = vector.broadcast %cst_161 : f32 to vector<40x128xf32>
    %222 = arith.minimumf %218, %221 : vector<40x128xf32>
    %223 = math.exp %222 : vector<40x128xf32>
    %cst_162 = arith.constant 1.000000e+00 : f32
    %224 = vector.broadcast %cst_162 : f32 to vector<40x128xf32>
    %225 = arith.subf %223, %224 : vector<40x128xf32>
    %226 = arith.select %220, %218, %225 : vector<40x128xi1>, vector<40x128xf32>
    %c0_163 = arith.constant 0 : index
    %c0_164 = arith.constant 0 : index
    %227 = vector.load %arg21[%c0_163, %c0_164] : memref<128x128xbf16, #tpu.memory_space<vmem>>, vector<128x128xbf16>
    %228 = arith.truncf %226 : vector<40x128xf32> to vector<40x128xbf16>
    %cst_165 = arith.constant dense<0.000000e+00> : vector<40x128xf32>
    %229 = tpu.matmul %228, %227, %cst_165 {dimension_numbers = #tpu.dot_dimension_numbers<[1], [0], [0], [1], [0, 0, 1, 1], [], []>} : vector<40x128xbf16>, vector<128x128xbf16>, vector<40x128xf32> -> vector<40x128xf32>
    %c0_166 = arith.constant 0 : index
    %c0_167 = arith.constant 0 : index
    %230 = vector.load %arg22[%c0_166, %c0_167] : memref<1x128xf32, #tpu.memory_space<vmem>>, vector<1x128xf32>
    %231 = vector.broadcast %230 : vector<1x128xf32> to vector<40x128xf32>
    %232 = arith.addf %229, %231 : vector<40x128xf32>
    %cst_168 = arith.constant 0.000000e+00 : f32
    %233 = vector.broadcast %cst_168 : f32 to vector<40x128xf32>
    %234 = arith.cmpf ogt, %232, %233 : vector<40x128xf32>
    %cst_169 = arith.constant 0.000000e+00 : f32
    %235 = vector.broadcast %cst_169 : f32 to vector<40x128xf32>
    %236 = arith.minimumf %232, %235 : vector<40x128xf32>
    %237 = math.exp %236 : vector<40x128xf32>
    %cst_170 = arith.constant 1.000000e+00 : f32
    %238 = vector.broadcast %cst_170 : f32 to vector<40x128xf32>
    %239 = arith.subf %237, %238 : vector<40x128xf32>
    %240 = arith.select %234, %232, %239 : vector<40x128xi1>, vector<40x128xf32>
    %cst_171 = arith.constant dense<0.000000e+00> : vector<128xf32>
    %241 = vector.multi_reduction <add>, %240, %cst_171 [0] : vector<40x128xf32> to vector<128xf32>
    %242 = vector.shape_cast %241 : vector<128xf32> to vector<1x128xf32>
    %cst_172 = arith.constant 4.000000e+01 : f32
    %243 = vector.broadcast %cst_172 : f32 to vector<1x128xf32>
    %244 = arith.divf %242, %243 : vector<1x128xf32>
    %245 = arith.mulf %240, %240 : vector<40x128xf32>
    %cst_173 = arith.constant dense<0.000000e+00> : vector<128xf32>
    %246 = vector.multi_reduction <add>, %245, %cst_173 [0] : vector<40x128xf32> to vector<128xf32>
    %247 = vector.shape_cast %246 : vector<128xf32> to vector<1x128xf32>
    %cst_174 = arith.constant 4.000000e+01 : f32
    %248 = vector.broadcast %cst_174 : f32 to vector<1x128xf32>
    %249 = arith.divf %247, %248 : vector<1x128xf32>
    %250 = arith.mulf %244, %244 : vector<1x128xf32>
    %251 = arith.subf %249, %250 : vector<1x128xf32>
    %cst_175 = arith.constant 0.000000e+00 : f32
    %252 = vector.broadcast %cst_175 : f32 to vector<1x128xf32>
    %253 = arith.maximumf %251, %252 : vector<1x128xf32>
    %254 = vector.broadcast %244 : vector<1x128xf32> to vector<40x128xf32>
    %255 = arith.subf %240, %254 : vector<40x128xf32>
    %cst_176 = arith.constant 9.99999974E-6 : f32
    %256 = vector.broadcast %cst_176 : f32 to vector<1x128xf32>
    %257 = arith.addf %253, %256 : vector<1x128xf32>
    %258 = math.rsqrt %257 : vector<1x128xf32>
    %259 = vector.broadcast %258 : vector<1x128xf32> to vector<40x128xf32>
    %260 = arith.mulf %255, %259 : vector<40x128xf32>
    %c0_177 = arith.constant 0 : index
    %c0_178 = arith.constant 0 : index
    %261 = vector.load %arg23[%c0_177, %c0_178] : memref<40x128xf32, #tpu.memory_space<vmem>>, vector<40x128xf32>
    tpu.vector_store %arg23[%c0_177, %c0_178], %260 {strides = array<i32>} : memref<40x128xf32, #tpu.memory_space<vmem>>, vector<40x128xf32>,
    return
  }
}

</mosaic_0001>

<bundles_post_ra>
// kernel: tpu_custom_call.1
= control target key start
LH: loop header
LB: loop body
LE: loop exit
PB: predicated region body
PF: predicated region fallthrough
CT: control target
= control target key end

     0   :  { %s4243_s0 = inlined_call_operand.vmem [shape: bf16[20,8], index: 0, kind: input, shape index: {}]   ;;  %s4244_s1 = inlined_call_operand.vmem [shape: bf16[20,5], index: 1, kind: input, shape index: {}]   ;;  %s4245_s2 = inlined_call_operand.vmem [shape: bf16[20,5], index: 2, kind: input, shape index: {}]   ;;  %s4246_s3 = inlined_call_operand.hbm [shape: bf16[5,20], index: 3, kind: input, shape index: {}]   ;;  %s4247_s4 = inlined_call_operand.hbm [shape: bf16[8,128], index: 4, kind: input, shape index: {}]   ;;  %s4248_s5 = inlined_call_operand.hbm [shape: f32[1,128], index: 5, kind: input, shape index: {}]   ;;  %s4249_s6 = inlined_call_operand.hbm [shape: bf16[128,128], index: 6, kind: input, shape index: {}]   ;;  %s4250_s7 = inlined_call_operand.hbm [shape: f32[1,128], index: 7, kind: input, shape index: {}]   ;;  %s4251_s8 = inlined_call_operand.hbm [shape: bf16[128,128], index: 8, kind: input, shape index: {}]   ;;  %s4252_s9 = inlined_call_operand.vmem [shape: bf16[128,128], index: 9, kind: input, shape index: {}]   ;;  %s4253_s10 = inlined_call_operand.vmem [shape: f32[1,128], index: 10, kind: input, shape index: {}]   ;;  %s4254_s11 = inlined_call_operand.hbm [shape: bf16[128,128], index: 11, kind: input, shape index: {}]   ;;  %s4255_s12 = inlined_call_operand.vmem [shape: f32[1,128], index: 12, kind: input, shape index: {}]   ;;  %s4256_s13 = inlined_call_operand.hbm [shape: bf16[128,128], index: 13, kind: input, shape index: {}]   ;;  %s4257_s14 = inlined_call_operand.vmem [shape: f32[1,128], index: 14, kind: input, shape index: {}]   ;;  %s4258_s15 = inlined_call_operand.hbm [shape: bf16[128,128], index: 15, kind: input, shape index: {}]   ;;  %s4259_s16 = inlined_call_operand.vmem [shape: f32[1,128], index: 16, kind: input, shape index: {}]   ;;  %s4260_s17 = inlined_call_operand.hbm [shape: bf16[128,128], index: 17, kind: input, shape index: {}]   ;;  %s4261_s18 = inlined_call_operand.hbm [shape: bf16[128,128], index: 18, kind: input, shape index: {}]   ;;  %s4262_s19 = inlined_call_operand.hbm [shape: bf16[128,128], index: 19, kind: input, shape index: {}]   ;;  %s4263_s20 = inlined_call_operand.vmem [shape: f32[1,128], index: 20, kind: input, shape index: {}]   ;;  %s4264_s21 = inlined_call_operand.hbm [shape: bf16[128,128], index: 21, kind: input, shape index: {}]   ;;  %s4265_s22 = inlined_call_operand.vmem [shape: f32[1,128], index: 22, kind: input, shape index: {}]   ;;  %s4266_s23 = inlined_call_operand.hbm [shape: f32[40,128], index: 23, kind: output, shape index: {}]  }
   0x1   :  { %4270 = sst [smem:[#allocation37_spill]] %s4243_s0 }
   0x2   :  { %4271 = sst [smem:[#allocation38_spill]] %s4244_s1 }
   0x3   :  { %4272 = sst [smem:[#allocation39_spill]] %s4245_s2 }
   0x4   :  { %4273 = sst [smem:[#allocation40_spill]] %s4246_s3 }
   0x5   :  { %4274 = sst [smem:[#allocation41_spill]] %s4247_s4 }
   0x6   :  { %4275 = sst [smem:[#allocation42_spill]] %s4248_s5 }
   0x7   :  { %4276 = sst [smem:[#allocation43_spill]] %s4249_s6 }
   0x8   :  { %4277 = sst [smem:[#allocation44_spill]] %s4250_s7 }
   0x9   :  { %28 = vsyncpa [#allocation8], 0 }
   0xa   :  { %29 = vsyncpa [#allocation11], 0 }
   0xb   :  { %30 = vsyncpa [#allocation14], 0 }
   0xc   :  { %31 = vsyncpa [#allocation17], 0 }
   0xd   :  { %32 = vsyncpa [#allocation20], 0 }
   0xe   :  { %33 = vsyncpa [#allocation23], 0 }
   0xf   :  { %34 = vsyncpa [#allocation26], 0 }
  0x10   :  { %35 = vsyncpa [#allocation9], 0  ;;  %s3758_s4 = smov [#allocation10]   ;;  %s3759_s24 = smov [#allocation13]  }
  0x11   :  { %s58_s30 = sshll.u32 %s3758_s4, 4  ;;  %s77_s25 = sshll.u32 %s3759_s24, 4  ;;  %s59_s30 = int_to_ptr.vmem [resolvable:$true] %s58_s30  ;;  %s78_s25 = int_to_ptr.vmem [resolvable:$true] %s77_s25 }
  0x12   :  { %s3470_s5 = scalar_lea.vmem %s59_s30, 64  ;;  %p3475_p1 = scmp.lt.s32.totalorder %s59_s30, %s59_s30 }
  0x13   :  { %p3471_p0 = scmp.ne.s32.totalorder %s59_s30, %s3470_s5  ;;  %p3476_p2 = scmp.lt.s32.totalorder %s3470_s5, %s3470_s5 }
  0x15   :  { %p3477_p3 = por %p3476_p2, %p3475_p1 }
  0x17   :  { %p3478_p4 = pnand %p3477_p3, %p3471_p0 }
  0x19   :  { %3481 = shalt.err (!%p3478_p4)
}
  0x1a   :  { %s4278_s2 = sld [smem:[#allocation41_spill]]  ;;  %s3490_s6 = scalar_lea.vmem %s78_s25, 1024 }
  0x1b   :  { %p3491_p5 = scmp.ne.s32.totalorder %s78_s25, %s3490_s6  ;;  %p3495_p6 = scmp.lt.s32.totalorder %s78_s25, %s78_s25 }
  0x1c   :  { %p3496_p7 = scmp.lt.s32.totalorder %s3490_s6, %s3490_s6 }
  0x1e   :  { %p3497_p8 = por %p3496_p7, %p3495_p6 }
  0x20   :  { %61 = dma.hbm_to_vmem [thread:$0]  %s4278_s2, 64, %s59_s30, [#allocation11]  }
  0x21   :  { %p3498_p9 = pnand %p3497_p8, %p3491_p5 }
  0x23   :  { %3501 = shalt.err (!%p3498_p9)
}
  0x24   :  { %s3760_s27 = smov 64   ;;  %s3761_s7 = smov 4  }
  0x25   :  { %s4279_s3 = sld [smem:[#allocation43_spill]]  ;;  %s3762_s0 = smov [#allocation16]  }
  0x26   :  { %s99_s4 = sshll.u32 %s3762_s0, 4  ;;  %s3763_s24 = smov [#allocation19]   ;;  %s100_s4 = int_to_ptr.vmem [resolvable:$true] %s99_s4 }
  0x27   :  { %s129_s30 = sshll.u32 %s3763_s24, 4  ;;  %s3510_s5 = scalar_lea.vmem %s100_s4, 1024  ;;  %s130_s30 = int_to_ptr.vmem [resolvable:$true] %s129_s30 }
  0x28   :  { %p3511_p10 = scmp.ne.s32.totalorder %s100_s4, %s3510_s5  ;;  %p3515_p11 = scmp.lt.s32.totalorder %s100_s4, %s100_s4 }
  0x29   :  { %p3516_p12 = scmp.lt.s32.totalorder %s3510_s5, %s3510_s5 }
  0x2b   :  { %83 = dma.hbm_to_vmem [thread:$0]  %s4279_s3, 1024, %s78_s25, [#allocation14], %s3760_s27, %s3760_s27, %s3761_s7  }
  0x2c   :  { %p3517_p13 = por %p3516_p12, %p3515_p11 }
  0x2e   :  { %p3518_p0 = pnand %p3517_p13, %p3511_p10 }
  0x30   :  { %3521 = shalt.err (!%p3518_p0)
}
  0x31   :  { %105 = dma.hbm_to_vmem [thread:$0]  %s4251_s8, 1024, %s100_s4, [#allocation17], %s3760_s27, %s3760_s27, %s3761_s7  }
  0x32   :  { %s3530_s25 = scalar_lea.vmem %s130_s30, 1024  ;;  %p3535_p2 = scmp.lt.s32.totalorder %s130_s30, %s130_s30 }
  0x33   :  { %p3531_p1 = scmp.ne.s32.totalorder %s130_s30, %s3530_s25  ;;  %p3536_p3 = scmp.lt.s32.totalorder %s3530_s25, %s3530_s25 }
  0x35   :  { %p3537_p4 = por %p3536_p3, %p3535_p2 }
  0x37   :  { %p3538_p5 = pnand %p3537_p4, %p3531_p1 }
  0x39   :  { %3541 = shalt.err (!%p3538_p5)
}
  0x3a   :  { %135 = dma.hbm_to_vmem [thread:$0]  %s4256_s13, 1024, %s130_s30, [#allocation20], %s3760_s27, %s3760_s27, %s3761_s7  }
  0x3b   :  { %s3764_s28 = smov [#allocation22]   ;;  %s3765_s3 = smov [#allocation25]  }
  0x3c   :  { %s157_s29 = sshll.u32 %s3764_s28, 4  ;;  %s181_s0 = sshll.u32 %s3765_s3, 4  ;;  %s158_s29 = int_to_ptr.vmem [resolvable:$true] %s157_s29  ;;  %s182_s0 = int_to_ptr.vmem [resolvable:$true] %s181_s0 }
  0x3d   :  { %s3550_s8 = scalar_lea.vmem %s158_s29, 1024  ;;  %p3555_p7 = scmp.lt.s32.totalorder %s158_s29, %s158_s29 }
  0x3e   :  { %p3551_p6 = scmp.ne.s32.totalorder %s158_s29, %s3550_s8  ;;  %p3556_p8 = scmp.lt.s32.totalorder %s3550_s8, %s3550_s8 }
  0x40   :  { %p3557_p9 = por %p3556_p8, %p3555_p7 }
  0x42   :  { %p3558_p10 = pnand %p3557_p9, %p3551_p6 }
  0x44   :  { %3561 = shalt.err (!%p3558_p10)
}
  0x45   :  { %163 = dma.hbm_to_vmem [thread:$0]  %s4260_s17, 1024, %s158_s29, [#allocation23], %s3760_s27, %s3760_s27, %s3761_s7  }
  0x46   :  { %s3570_s13 = scalar_lea.vmem %s182_s0, 1024  ;;  %p3575_p12 = scmp.lt.s32.totalorder %s182_s0, %s182_s0 }
  0x47   :  { %p3571_p11 = scmp.ne.s32.totalorder %s182_s0, %s3570_s13  ;;  %p3576_p13 = scmp.lt.s32.totalorder %s3570_s13, %s3570_s13 }
  0x49   :  { %p3577_p0 = por %p3576_p13, %p3575_p12 }
  0x4b   :  { %p3578_p1 = pnand %p3577_p0, %p3571_p11 }
  0x4d   :  { %3581 = shalt.err (!%p3578_p1)
}
  0x4e   :  { %187 = dma.hbm_to_vmem [thread:$0]  %s4262_s19, 1024, %s182_s0, [#allocation26], %s3760_s27, %s3760_s27, %s3761_s7  }
  0x4f   :  { %s3766_s1 = smov [#allocation7]   ;;  %s3767_s25 = smov [#allocation12]  }
  0x50   :  { %s48_s26 = sshll.u32 %s3766_s1, 4  ;;  %s68_s2 = sshll.u32 %s3767_s25, 4  ;;  %s49_s26 = int_to_ptr.vmem [resolvable:$true] %s48_s26  ;;  %s69_s2 = int_to_ptr.vmem [resolvable:$true] %s68_s2 }
  0x51   :  { %s3590_s17 = scalar_lea.vmem %s49_s26, 64  ;;  %p3595_p3 = scmp.lt.s32.totalorder %s49_s26, %s49_s26 }
  0x52   :  { %p3591_p2 = scmp.ne.s32.totalorder %s49_s26, %s3590_s17  ;;  %p3596_p4 = scmp.lt.s32.totalorder %s3590_s17, %s3590_s17 }
  0x54   :  { %p3597_p5 = por %p3596_p4, %p3595_p3 }
  0x56   :  { %p3598_p6 = pnand %p3597_p5, %p3591_p2 }
  0x58   :  { %3601 = shalt.err (!%p3598_p6)
}
  0x59   :  { %s4280_s29 = sld [smem:[#allocation40_spill]]  ;;  %s3610_s3 = scalar_lea.vmem %s69_s2, 16 }
  0x5a   :  { %p3611_p7 = scmp.ne.s32.totalorder %s69_s2, %s3610_s3  ;;  %s3614_s19 = scalar_lea.vmem %s69_s2, 32 }
  0x5b   :  { %p3615_p8 = scmp.lt.s32.totalorder %s69_s2, %s69_s2  ;;  %p3616_p9 = scmp.lt.s32.totalorder %s3614_s19, %s3610_s3 }
  0x5d   :  { %p3617_p10 = por %p3616_p9, %p3615_p8 }
  0x5f   :  { %51 = dma.hbm_to_vmem [thread:$0]  %s4280_s29, 64, %s49_s26, [#allocation8]  }
  0x60   :  { %p3618_p11 = pnand %p3617_p10, %p3611_p7 }
  0x62   :  { %3621 = shalt.err (!%p3618_p11)
}
  0x63   :  { %s4281_s4 = sld [smem:[#allocation42_spill]]  ;;  %s3768_s24 = smov [#allocation15]  }
  0x64   :  { %s90_s13 = sshll.u32 %s3768_s24, 4  ;;  %s3769_s30 = smov [#allocation18]   ;;  %s91_s13 = int_to_ptr.vmem [resolvable:$true] %s90_s13 }
  0x65   :  { %s115_s5 = sshll.u32 %s3769_s30, 4  ;;  %s3630_s1 = scalar_lea.vmem %s91_s13, 16  ;;  %s116_s5 = int_to_ptr.vmem [resolvable:$true] %s115_s5 }
  0x66   :  { %p3631_p12 = scmp.ne.s32.totalorder %s91_s13, %s3630_s1  ;;  %s3634_s26 = scalar_lea.vmem %s91_s13, 32 }
  0x67   :  { %p3635_p13 = scmp.lt.s32.totalorder %s91_s13, %s91_s13  ;;  %p3636_p0 = scmp.lt.s32.totalorder %s3634_s26, %s3630_s1 }
  0x69   :  { %71 = dma.hbm_to_vmem [thread:$0]  %s4281_s4, 16, %s69_s2, [#allocation11]  }
  0x6a   :  { %p3637_p1 = por %p3636_p0, %p3635_p13 }
  0x6c   :  { %p3638_p2 = pnand %p3637_p1, %p3631_p12 }
  0x6e   :  { %3641 = shalt.err (!%p3638_p2)
}
  0x6f   :  { %s4282_s6 = sld [smem:[#allocation44_spill]]  ;;  %s3650_s28 = scalar_lea.vmem %s116_s5, 1024 }
  0x70   :  { %p3651_p3 = scmp.ne.s32.totalorder %s116_s5, %s3650_s28  ;;  %p3655_p4 = scmp.lt.s32.totalorder %s116_s5, %s116_s5 }
  0x71   :  { %p3656_p5 = scmp.lt.s32.totalorder %s3650_s28, %s3650_s28 }
  0x73   :  { %p3657_p6 = por %p3656_p5, %p3655_p4 }
  0x75   :  { %93 = dma.hbm_to_vmem [thread:$0]  %s4282_s6, 16, %s91_s13, [#allocation14]  }
  0x76   :  { %p3658_p7 = pnand %p3657_p6, %p3651_p3 }
  0x78   :  { %3661 = shalt.err (!%p3658_p7)
}
  0x79   :  { %121 = dma.hbm_to_vmem [thread:$0]  %s4254_s11, 1024, %s116_s5, [#allocation17], %s3760_s27, %s3760_s27, %s3761_s7  }
  0x7a   :  { %s3770_s3 = smov [#allocation21]   ;;  %s3771_s0 = smov [#allocation24]  }
  0x7b   :  { %s143_s19 = sshll.u32 %s3770_s3, 4  ;;  %s169_s8 = sshll.u32 %s3771_s0, 4  ;;  %s144_s19 = int_to_ptr.vmem [resolvable:$true] %s143_s19  ;;  %s170_s8 = int_to_ptr.vmem [resolvable:$true] %s169_s8 }
  0x7c   :  { %s3670_s4 = scalar_lea.vmem %s144_s19, 1024  ;;  %p3675_p9 = scmp.lt.s32.totalorder %s144_s19, %s144_s19 }
  0x7d   :  { %p3671_p8 = scmp.ne.s32.totalorder %s144_s19, %s3670_s4  ;;  %p3676_p10 = scmp.lt.s32.totalorder %s3670_s4, %s3670_s4 }
  0x7f   :  { %p3677_p11 = por %p3676_p10, %p3675_p9 }
  0x81   :  { %p3678_p12 = pnand %p3677_p11, %p3671_p8 }
  0x83   :  { %3681 = shalt.err (!%p3678_p12)
}
  0x84   :  { %149 = dma.hbm_to_vmem [thread:$0]  %s4258_s15, 1024, %s144_s19, [#allocation20], %s3760_s27, %s3760_s27, %s3761_s7  }
  0x85   :  { %s3690_s11 = scalar_lea.vmem %s170_s8, 1024  ;;  %p3695_p0 = scmp.lt.s32.totalorder %s170_s8, %s170_s8 }
  0x86   :  { %p3691_p13 = scmp.ne.s32.totalorder %s170_s8, %s3690_s11  ;;  %p3696_p1 = scmp.lt.s32.totalorder %s3690_s11, %s3690_s11 }
  0x88   :  { %p3697_p2 = por %p3696_p1, %p3695_p0 }
  0x8a   :  { %p3698_p3 = pnand %p3697_p2, %p3691_p13 }
  0x8c   :  { %3701 = shalt.err (!%p3698_p3)
}
  0x8d   :  { %175 = dma.hbm_to_vmem [thread:$0]  %s4261_s18, 1024, %s170_s8, [#allocation23], %s3760_s27, %s3760_s27, %s3761_s7  }
  0x8e   :  { %s3772_s1 = smov [#allocation27]  }
  0x8f   :  { %s195_s26 = sshll.u32 %s3772_s1, 4  ;;  %s196_s26 = int_to_ptr.vmem [resolvable:$true] %s195_s26 }
  0x90   :  { %s3710_s25 = scalar_lea.vmem %s196_s26, 1024  ;;  %p3715_p5 = scmp.lt.s32.totalorder %s196_s26, %s196_s26 }
  0x91   :  { %p3711_p4 = scmp.ne.s32.totalorder %s196_s26, %s3710_s25  ;;  %p3716_p6 = scmp.lt.s32.totalorder %s3710_s25, %s3710_s25 }
  0x93   :  { %p3717_p7 = por %p3716_p6, %p3715_p5 }
  0x95   :  { %p3718_p8 = pnand %p3717_p7, %p3711_p4 }
  0x97   :  { %3721 = shalt.err (!%p3718_p8)
}
  0x98   :  { %201 = dma.hbm_to_vmem [thread:$0]  %s4264_s21, 1024, %s196_s26, [#allocation26], %s3760_s27, %s3760_s27, %s3761_s7  }
  0x99   :  { %3742 = dma.done.wait [#allocation8], 64  }
  0x9a   :  { %3743 = vsyncadd [#allocation8], 4294967232 }
  0x9b   :  { %3744 = dma.done.wait [#allocation11], 80  }
  0x9c   :  { %3745 = vsyncadd [#allocation11], 4294967216 }
  0x9d   :  { %3746 = dma.done.wait [#allocation14], 1040  }
  0x9e   :  { %3747 = vsyncadd [#allocation14], 4294966256 }
  0x9f   :  { %3748 = dma.done.wait [#allocation17], 2048  }
  0xa0   :  { %3749 = vsyncadd [#allocation17], 4294965248 }
  0xa1   :  { %3750 = dma.done.wait [#allocation20], 2048  }
  0xa2   :  { %3751 = vsyncadd [#allocation20], 4294965248 }
  0xa3   :  { %3752 = dma.done.wait [#allocation23], 2048  }
  0xa4   :  { %3753 = vsyncadd [#allocation23], 4294965248 }
  0xa5   :  { %3754 = dma.done.wait [#allocation26], 2048  }
  0xa6   :  { %3755 = vsyncadd [#allocation26], 4294965248  ;;  %vm270_vm0 = vcmask 1043456   ;;  %vm263_vm1 = vcmask 64512   ;;  %v247_v0 = vld [vmem:[#allocation10] sm:$0xf] }
  0xa7   :  { %3274 = vmatprep.subr.msk.bf16.mxu0 %vm270_vm0, %v247_v0  ;;  %v272_v1 = vsel %vm270_vm0, %v247_v0, 0  ;;  %s4283_s27 = sld [smem:[#allocation37_spill]]  ;;  %v3298_v4 = vld [vmem:[#allocation13 + $0x38] sm:$0xff]   ;;  %v3299_v5 = vld [vmem:[#allocation13 + $0x30] sm:$0xff]   ;;  %v3300_v6 = vld [vmem:[#allocation13 + $0x28] sm:$0xff]   ;;  %vm531_vm5 = vcmask 39936  }
  0xa8   :  { %2949 = vmatpush3.bf16.msra.mxu0 %v272_v1  ;;  %2954 = vmatprep.subr.bf16.mxu1 %v3298_v4  ;;  %v3301_v7 = vld [vmem:[#allocation13 + $0x20] sm:$0xff]   ;;  %v3302_v8 = vld [vmem:[#allocation13 + $0x18] sm:$0xff]   ;;  %v3303_v9 = vld [vmem:[#allocation13 + $0x10] sm:$0xff]   ;;  %s4284_s29 = sld [smem:[#allocation39_spill]]  ;;  %v3773_v38 = vmov 0.0   ;;  %vm538_vm9 = vcmask 1041408  }
  0xa9   :  { %2955 = vmatpush3.bf16.msra.mxu1 %v3298_v4  ;;  %v3304_v10 = vld [vmem:[#allocation13 + $0x8] sm:$0xff]   ;;  %v3305_v11 = vld [vmem:[#allocation13] sm:$0xff]   ;;  %v2654_v12 = vld [vmem:[#allocation12] ss:$0 sm:$0xff]  ;;  %vm539_vm10 = vcmask 1042432   ;;  %s4285_s30 = sld [smem:[#allocation38_spill]] }
  0xaa   :  { %2956 = vmatprep.subr.bf16.mxu1 %v3299_v5  ;;  %v3316_v39 = vld [vmem:[%s4252_s9 + $0x38] sm:$0xff]   ;;  %v3318_v40 = vld [vmem:[%s4252_s9 + $0x30] sm:$0xff]   ;;  %v2662_v41 = vld [vmem:[#allocation15] ss:$0 sm:$0xff]  ;;  %vm3775_vm11 = vmmov 0  }
  0xad   :  { %v3296_v2 = vld [vmem:[%s4283_s27] sm:$0xff]   ;;  %v3297_v3 = vld [vmem:[%s4283_s27 + $0x8] ss:$0 sps:$4 sm:$0x33]   ;;  %2957 = vmatpush3.bf16.msra.mxu1 %v3299_v5 }
  0xae   :  { %2950 = vmatprep.mubr.msk.bf16.mxu0 %vm263_vm1, %v3296_v2  ;;  %2958 = vmatprep.subr.bf16.mxu1 %v3300_v6  ;;  %v3306_v37 = vld [vmem:[%s4284_s29] sm:$0xff]  }
  0xaf   :  { %2951 = vmatmul.mubr.msk.bf16.vlgmr.msra.gmra.mxu0 %vm263_vm1, %v3297_v3 }
  0xb0   :  { %2976 = vmatprep.mubr.msk.bf16.mxu0 %vm531_vm5, %v3306_v37 }
  0xb1   :  { %2959 = vmatpush3.bf16.msra.mxu1 %v3300_v6 }
  0xb2   :  { %2960 = vmatprep.subr.bf16.mxu1 %v3301_v7 }
  0xb5   :  { %2961 = vmatpush3.bf16.msra.mxu1 %v3301_v7 }
  0xb6   :  { %2962 = vmatprep.subr.bf16.mxu1 %v3302_v8 }
  0xb9   :  { %2963 = vmatpush3.bf16.msra.mxu1 %v3302_v8 }
  0xba   :  { %2964 = vmatprep.subr.bf16.mxu1 %v3303_v9 }
  0xbd   :  { %2965 = vmatpush3.bf16.msra.mxu1 %v3303_v9 }
  0xbe   :  { %2966 = vmatprep.subr.bf16.mxu1 %v3304_v10 }
  0xc1   :  { %2967 = vmatpush3.bf16.msra.mxu1 %v3304_v10 }
  0xc2   :  { %2968 = vmatprep.subr.bf16.mxu1 %v3305_v11 }
  0xc5   :  { %2969 = vmatpush3.bf16.msra.mxu1 %v3305_v11 }
  0xc6   :  { %2998 = vmatprep.subr.bf16.mxu1 %v3773_v38 }
 0x16f   :  { %v2952_v13 = vpop.f32.mrf.mxu0 }
 0x170   :  { %v317_v14 = vadd.f32 %v2952_v13, %v2654_v12 }
 0x171   :  { %v308_v15 = vpop.f32.mrf.mxu0 }
 0x172   :  { %v327_v16 = vmin.f32 %v317_v14, 0.0  ;;  %v309_v17 = vadd.f32 %v2654_v12, %v308_v15  ;;  %vm324_vm2 = vcmp.gt.f32.partialorder %v317_v14, 0.0 }
 0x173   :  { %v2953_v18 = vpop.f32.mrf.mxu0 }
 0x174   :  { %v332_v19 = vmul.f32 1.442695, %v327_v16  ;;  %v325_v20 = vmin.f32 %v309_v17, 0.0  ;;  %vm322_vm3 = vcmp.gt.f32.partialorder %v309_v17, 0.0 }
 0x175   :  { %v311_v21 = vpop.f32.mrf.mxu0 }
 0x176   :  { %v328_v22 = vmul.f32 1.442695, %v325_v20  ;;  %v312_v23 = vadd.f32 %v2654_v12, %v311_v21  ;;  %3394 = vpow2.f32 %v332_v19 }
 0x178   :  { %3396 = vpow2.f32 %v328_v22  ;;  %v326_v24 = vmin.f32 %v312_v23, 0.0  ;;  %vm323_vm4 = vcmp.gt.f32.partialorder %v312_v23, 0.0 }
 0x17a   :  { %v330_v25 = vmul.f32 1.442695, %v326_v24 }
 0x17c   :  { %3398 = vpow2.f32 %v330_v25 }
 0x183   :  { %v3395_v26 = vpop.eup %3394 }
 0x184   :  { %v2661_v28 = vadd.f32 -1.0, %v3395_v26 }
 0x185   :  { %v3397_v27 = vpop.eup %3396 }
 0x186   :  { %v2659_v29 = vadd.f32 -1.0, %v3397_v27  ;;  %v339_v32 = vsel %vm324_vm2, %v317_v14, %v2661_v28 }
 0x187   :  { %v357_v36 = vpack.c.bf16 %v339_v32, %v339_v32 }
 0x188   :  { %v337_v33 = vsel %vm322_vm3, %v309_v17, %v2659_v29 }
 0x189   :  { %v3399_v30 = vpop.eup %3398 }
 0x18a   :  { %v2660_v31 = vadd.f32 -1.0, %v3399_v30 }
 0x18c   :  { %v338_v34 = vsel %vm323_vm4, %v312_v23, %v2660_v31 }
 0x18d   :  { %v356_v35 = vpack.c.bf16 %v338_v34, %v337_v33  ;;  %v3774_v34 = vmov 65535  }
 0x18f   :  { %2970 = vmatprep.mubr.bf16.mxu1 %v356_v35  ;;  %v540_v35 = vsel %vm538_vm9, 4294967295, %v3774_v34 }
 0x190   :  { %2971 = vmatmul.mubr.bf16.vlgmr.msra.gmra.mxu1 %v357_v36  ;;  %v3989_v37 = vsel %vm539_vm10, %v540_v35, 0  ;;  %v3330_v35 = vld [vmem:[#allocation18 + $0x38] sm:$0xff]  }
 0x191   :  { %2999 = vmatpush3.bf16.msra.mxu1 %v3316_v39  ;;  %3014 = vmatprep.mubr.msk.bf16.mxu1 %vm3775_vm11, %v3773_v38 }
 0x192   :  { %3000 = vmatprep.subr.bf16.mxu1 %v3773_v38 }
 0x195   :  { %3001 = vmatpush3.bf16.msra.mxu1 %v3318_v40 }
 0x196   :  { %3002 = vmatprep.subr.bf16.mxu1 %v3773_v38 }
 0x250   :  { %v2972_v42 = vpop.f32.mrf.mxu1 }
 0x251   :  { %v456_v43 = vadd.f32 %v2972_v42, %v2662_v41 }
 0x252   :  { %v447_v44 = vpop.f32.mrf.mxu1 }
 0x253   :  { %v466_v45 = vmin.f32 %v456_v43, 0.0  ;;  %v448_v46 = vadd.f32 %v2662_v41, %v447_v44  ;;  %vm463_vm6 = vcmp.gt.f32.partialorder %v456_v43, 0.0 }
 0x254   :  { %v2973_v47 = vpop.f32.mrf.mxu1 }
 0x255   :  { %v471_v48 = vmul.f32 1.442695, %v466_v45  ;;  %v464_v49 = vmin.f32 %v448_v46, 0.0  ;;  %vm461_vm7 = vcmp.gt.f32.partialorder %v448_v46, 0.0  ;;  %v3308_v47 = vld [vmem:[%s4285_s30] sm:$0xff]  }
 0x256   :  { %v450_v50 = vpop.f32.mrf.mxu1  ;;  %v3307_v45 = vld [vmem:[%s4284_s29 + $0x8] ss:$0 sps:$4 sm:$0x33]  }
 0x257   :  { %3400 = vpow2.f32 %v471_v48  ;;  %v467_v51 = vmul.f32 1.442695, %v464_v49  ;;  %v451_v52 = vadd.f32 %v2662_v41, %v450_v50  ;;  %v3309_v50 = vld [vmem:[%s4285_s30 + $0x8] ss:$0 sps:$4 sm:$0x33]  }
 0x259   :  { %3402 = vpow2.f32 %v467_v51  ;;  %v465_v53 = vmin.f32 %v451_v52, 0.0  ;;  %vm462_vm8 = vcmp.gt.f32.partialorder %v451_v52, 0.0 }
 0x25b   :  { %v469_v54 = vmul.f32 1.442695, %v465_v53 }
 0x25d   :  { %3404 = vpow2.f32 %v469_v54  ;;  %v3311_v54 = vld [vmem:[%s4284_s29 + $0x8] ss:$0 sps:$4 sm:$0x33]  }
 0x264   :  { %v3401_v55 = vpop.eup %3400 }
 0x265   :  { %v2673_v57 = vadd.f32 -1.0, %v3401_v55  ;;  %v3312_v55 = vld [vmem:[%s4285_s30] sm:$0xff]  }
 0x266   :  { %v3403_v56 = vpop.eup %3402 }
 0x267   :  { %v2671_v58 = vadd.f32 -1.0, %v3403_v56  ;;  %v478_v60 = vsel %vm463_vm6, %v456_v43, %v2673_v57  ;;  %v3313_v56 = vld [vmem:[%s4285_s30 + $0x8] ss:$0 sps:$4 sm:$0x33]  }
 0x268   :  { %v492_v63 = vmul.f32 %v478_v60, %v478_v60  ;;  %v480_v4 = vsel %vm270_vm0, %v478_v60, 0.0  ;;  %v3314_v57 = vld [vmem:[#allocation16 + $0x38] sm:$0xff]  }
 0x269   :  { %v476_v61 = vsel %vm461_vm7, %v448_v46, %v2671_v58  ;;  %v3315_v58 = vld [vmem:[#allocation16 + $0x30] sm:$0xff]   ;;  %vm1326_vm7 = vcmask 162816  }
 0x26a   :  { %v3405_v59 = vpop.eup %3404  ;;  %v490_v1 = vmul.f32 %v476_v61, %v476_v61  ;;  %v494_v7 = vsel %vm270_vm0, %v492_v63, 0.0  ;;  %v3322_v63 = vld [vmem:[%s4252_s9 + $0x20] sm:$0xff]  }
 0x26b   :  { %v2672_v62 = vadd.f32 -1.0, %v3405_v59  ;;  %v3317_v59 = vld [vmem:[#allocation16 + $0x28] sm:$0xff]  }
 0x26d   :  { %v477_v0 = vsel %vm462_vm8, %v451_v52, %v2672_v62  ;;  %v3310_v52 = vld [vmem:[%s4284_s29] sm:$0xff]  }
 0x26e   :  { %v479_v2 = vadd.f32 %v477_v0, %v476_v61  ;;  %v491_v3 = vmul.f32 %v477_v0, %v477_v0  ;;  %v3321_v62 = vld [vmem:[#allocation16 + $0x18] sm:$0xff]  }
 0x270   :  { %v481_v5 = vadd.f32 %v480_v4, %v479_v2  ;;  %v493_v6 = vadd.f32 %v491_v3, %v490_v1  ;;  %v3324_v1 = vld [vmem:[%s4252_s9 + $0x18] sm:$0xff]   ;;  %v3326_v3 = vld [vmem:[%s4252_s9 + $0x10] sm:$0xff]  }
 0x271   :  { %v3325_v2 = vld [vmem:[#allocation16 + $0x8] sm:$0xff]   ;;  %v3327_v4 = vld [vmem:[#allocation16] sm:$0xff]  }
 0x272   :  { %v482_v8 = vrot.slane %v481_v5, 4  ;;  %v495_v9 = vadd.f32 %v494_v7, %v493_v6  ;;  %v3329_v6 = vld [vmem:[%s4252_s9] sm:$0xff]  }
 0x274   :  { %v483_v10 = vadd.f32 %v482_v8, %v481_v5  ;;  %v496_v11 = vrot.slane %v495_v9, 4  ;;  %v3328_v5 = vld [vmem:[%s4252_s9 + $0x8] sm:$0xff]  }
 0x276   :  { %v484_v12 = vrot.slane %v483_v10, 2  ;;  %v497_v13 = vadd.f32 %v496_v11, %v495_v9 }
 0x278   :  { %v485_v14 = vadd.f32 %v484_v12, %v483_v10  ;;  %v498_v15 = vrot.slane %v497_v13, 2 }
 0x27a   :  { %v486_v16 = vrot.slane %v485_v14, 1  ;;  %v499_v17 = vadd.f32 %v498_v15, %v497_v13 }
 0x27c   :  { %v487_v18 = vadd.f32 %v486_v16, %v485_v14  ;;  %v500_v19 = vrot.slane %v499_v17, 1 }
 0x27e   :  { %v489_v20 = vmul.f32 0.05, %v487_v18  ;;  %v501_v21 = vadd.f32 %v500_v19, %v499_v17 }
 0x280   :  { %v502_v22 = vmul.f32 0.05, %v501_v21  ;;  %v503_v23 = vmul.f32 %v489_v20, %v489_v20  ;;  %v506_v27 = vsub.f32 %v476_v61, %v489_v20  ;;  %v507_v28 = vsub.f32 %v477_v0, %v489_v20  ;;  %v3320_v61 = vld [vmem:[%s4252_s9 + $0x28] sm:$0xff]   ;;  %v3323_v0 = vld [vmem:[#allocation16 + $0x10] sm:$0xff]  }
 0x281   :  { %v508_v29 = vsub.f32 %v478_v60, %v489_v20  ;;  %v3319_v60 = vld [vmem:[#allocation16 + $0x20] sm:$0xff]   ;;  %3003 = vmatpush3.bf16.msra.mxu1 %v3320_v61 }
 0x282   :  { %v504_v24 = vsub.f32 %v502_v22, %v503_v23  ;;  %3004 = vmatprep.subr.bf16.mxu1 %v3773_v38 }
 0x284   :  { %v505_v25 = vmax.f32 %v504_v24, 0.0 }
 0x285   :  { %3005 = vmatpush3.bf16.msra.mxu1 %v3322_v63 }
 0x286   :  { %v509_v26 = vadd.f32 1e-05, %v505_v25  ;;  %3006 = vmatprep.subr.bf16.mxu1 %v3773_v38 }
 0x288   :  { %3406 = vrsqrt.f32 %v509_v26 }
 0x289   :  { %3007 = vmatpush3.bf16.msra.mxu1 %v3324_v1 }
 0x28a   :  { %3008 = vmatprep.subr.bf16.mxu1 %v3773_v38 }
 0x28d   :  { %3009 = vmatpush3.bf16.msra.mxu1 %v3326_v3 }
 0x28e   :  { %3010 = vmatprep.subr.bf16.mxu1 %v3773_v38 }
 0x291   :  { %3011 = vmatpush3.bf16.msra.mxu1 %v3328_v5 }
 0x292   :  { %3012 = vmatprep.subr.bf16.mxu1 %v3773_v38 }
 0x295   :  { %v3407_v30 = vpop.eup %3406  ;;  %3013 = vmatpush3.bf16.msra.mxu1 %v3329_v6 }
 0x296   :  { %v511_v31 = vmul.f32 %v3407_v30, %v506_v27  ;;  %v512_v32 = vmul.f32 %v3407_v30, %v507_v28  ;;  %v513_v33 = vmul.f32 %v3407_v30, %v508_v29  ;;  %3054 = vmatprep.subr.bf16.mxu1 %v3773_v38 }
 0x298   :  { %514 = vst [vmem:[#allocation2] sm:$0xff] %v511_v31  ;;  %515 = vst [vmem:[#allocation2 + $0x8] sm:$0xff] %v512_v32 }
 0x299   :  { %516 = vst [vmem:[#allocation2 + $0x10] sm:$0xf] %v513_v33 }
 0x29f   :  { %v517_v36 = vld [vmem:[#allocation2] sm:$0x1f]  ;;  %v518_v39 = vld [vmem:[#allocation2 + $0xa] sm:$0x1f]  ;;  %v668_v42 = vld [vmem:[#allocation2 + $0x5] sm:$0x1f] }
 0x2a0   :  { %v522_v40 = vpack.c.bf16 %v517_v36, %v517_v36  ;;  %v599_v41 = vpack.c.bf16 %v518_v39, %v518_v39  ;;  %v673_v46 = vpack.c.bf16 %v668_v42, %v668_v42  ;;  %v669_v49 = vld [vmem:[#allocation2 + $0xf] sm:$0x1f]  ;;  %v3331_v36 = vld [vmem:[#allocation18 + $0x30] sm:$0xff]   ;;  %v3332_v39 = vld [vmem:[#allocation18 + $0x28] sm:$0xff]  }
 0x2a1   :  { %v745_v51 = vpack.c.bf16 %v669_v49, %v669_v49  ;;  %v3335_v42 = vld [vmem:[#allocation18 + $0x10] sm:$0xff]  }
 0x2a2   :  { %v543_v43 = vand.u32 %v3989_v37, %v522_v40  ;;  %v615_v44 = vand.u32 %v599_v41, %v3989_v37  ;;  %v689_v48 = vand.u32 %v673_v46, %v3989_v37  ;;  %v3333_v40 = vld [vmem:[#allocation18 + $0x20] sm:$0xff]   ;;  %v3334_v41 = vld [vmem:[#allocation18 + $0x18] sm:$0xff]  }
 0x2a3   :  { %v761_v53 = vand.u32 %v745_v51, %v3989_v37 }
 0x2a4   :  { %2974 = vmatprep.subr.bf16.mxu0 %v543_v43 }
 0x2a5   :  { %2975 = vmatpush3.bf16.msra.mxu0 %v543_v43  ;;  %v3336_v43 = vld [vmem:[#allocation18 + $0x8] sm:$0xff]  }
 0x2a6   :  { %2980 = vmatprep.subr.bf16.mxu0 %v615_v44 }
 0x2a8   :  { %2977 = vmatmul.mubr.msk.bf16.vlgmr.msra.gmra.mxu0 %vm531_vm5, %v3307_v45 }
 0x2a9   :  { %2981 = vmatpush3.bf16.msra.mxu0 %v615_v44  ;;  %2982 = vmatprep.mubr.msk.bf16.mxu0 %vm531_vm5, %v3308_v47  ;;  %v3337_v44 = vld [vmem:[#allocation18] sm:$0xff]  }
 0x2aa   :  { %2986 = vmatprep.subr.bf16.mxu0 %v689_v48 }
 0x2b0   :  { %2983 = vmatmul.mubr.msk.bf16.vlgmr.msra.gmra.mxu0 %vm531_vm5, %v3309_v50  ;;  %v2706_v50 = vld [vmem:[%s4253_s10] ss:$0 sm:$0xff] }
 0x2b1   :  { %2987 = vmatpush3.bf16.msra.mxu0 %v689_v48  ;;  %2988 = vmatprep.mubr.msk.bf16.mxu0 %vm531_vm5, %v3310_v52 }
 0x2b2   :  { %2992 = vmatprep.subr.bf16.mxu0 %v761_v53 }
 0x2b8   :  { %2989 = vmatmul.mubr.msk.bf16.vlgmr.msra.gmra.mxu0 %vm531_vm5, %v3311_v54 }
 0x2b9   :  { %2993 = vmatpush3.bf16.msra.mxu0 %v761_v53  ;;  %2994 = vmatprep.mubr.msk.bf16.mxu0 %vm531_vm5, %v3312_v55 }
 0x2ba   :  { %3026 = vmatprep.subr.bf16.mxu0 %v3773_v38 }
 0x2c0   :  { %2995 = vmatmul.mubr.msk.bf16.vlgmr.msra.gmra.mxu0 %vm531_vm5, %v3313_v56 }
 0x2c1   :  { %3027 = vmatpush3.bf16.msra.mxu0 %v3314_v57  ;;  %3042 = vmatprep.mubr.msk.bf16.mxu0 %vm3775_vm11, %v3773_v38 }
 0x2c2   :  { %3028 = vmatprep.subr.bf16.mxu0 %v3773_v38 }
 0x2c5   :  { %3029 = vmatpush3.bf16.msra.mxu0 %v3315_v58 }
 0x2c6   :  { %3030 = vmatprep.subr.bf16.mxu0 %v3773_v38 }
 0x2c9   :  { %3031 = vmatpush3.bf16.msra.mxu0 %v3317_v59 }
 0x2ca   :  { %3032 = vmatprep.subr.bf16.mxu0 %v3773_v38 }
 0x2cd   :  { %3033 = vmatpush3.bf16.msra.mxu0 %v3319_v60 }
 0x2ce   :  { %3034 = vmatprep.subr.bf16.mxu0 %v3773_v38 }
 0x2d1   :  { %3035 = vmatpush3.bf16.msra.mxu0 %v3321_v62 }
 0x2d2   :  { %3036 = vmatprep.subr.bf16.mxu0 %v3773_v38 }
 0x2d5   :  { %3037 = vmatpush3.bf16.msra.mxu0 %v3323_v0 }
 0x2d6   :  { %3038 = vmatprep.subr.bf16.mxu0 %v3773_v38 }
 0x2d9   :  { %3039 = vmatpush3.bf16.msra.mxu0 %v3325_v2 }
 0x2da   :  { %3040 = vmatprep.subr.bf16.mxu0 %v3773_v38 }
 0x2dd   :  { %3041 = vmatpush3.bf16.msra.mxu0 %v3327_v4 }
 0x2de   :  { %3082 = vmatprep.subr.bf16.mxu0 %v3773_v38 }
 0x368   :  { %v2978_v7 = vpop.f32.mrf.mxu0 }
 0x369   :  { %595 = vst [vmem:[#allocation3 + $0x10] sm:$0xf] %v2978_v7 }
 0x36a   :  { %v579_v8 = vpop.f32.mrf.mxu0 }
 0x36c   :  { %v2979_v9 = vpop.f32.mrf.mxu0 }
 0x36e   :  { %v582_v10 = vpop.f32.mrf.mxu0 }
 0x36f   :  { %v835_v11 = vpack.c.bf16 %v582_v10, %v579_v8 }
 0x370   :  { %v2984_v12 = vpop.f32.mrf.mxu0 }
 0x371   :  { %667 = vst [vmem:[#allocation4 + $0x10] sm:$0xf] %v2984_v12  ;;  %3043 = vmatmul.mubr.bf16.vlgmr.msra.gmra.mxu0 %v835_v11 }
 0x372   :  { %v651_v13 = vpop.f32.mrf.mxu0  ;;  %3046 = vmatprep.mubr.msk.bf16.mxu0 %vm3775_vm11, %v3773_v38 }
 0x374   :  { %v2985_v14 = vpop.f32.mrf.mxu0 }
 0x376   :  { %v654_v15 = vpop.f32.mrf.mxu0 }
 0x377   :  { %v859_v16 = vpack.c.bf16 %v654_v15, %v651_v13 }
 0x378   :  { %v2990_v17 = vpop.f32.mrf.mxu0 }
 0x379   :  { %741 = vst [vmem:[#allocation3 + $0x24] sm:$0xf] %v2990_v17  ;;  %3015 = vmatmul.mubr.bf16.vlgmr.msra.gmra.mxu1 %v859_v16 }
 0x37a   :  { %v725_v18 = vpop.f32.mrf.mxu0  ;;  %3018 = vmatprep.mubr.msk.bf16.mxu1 %vm3775_vm11, %v3773_v38  ;;  %3055 = vmatpush3.bf16.msra.mxu1 %v3330_v35 }
 0x37b   :  { %739 = vst [vmem:[#allocation3 + $0x14] sm:$0xff] %v725_v18  ;;  %3056 = vmatprep.subr.bf16.mxu1 %v3773_v38 }
 0x37c   :  { %v2991_v19 = vpop.f32.mrf.mxu0 }
 0x37e   :  { %v728_v20 = vpop.f32.mrf.mxu0  ;;  %3057 = vmatpush3.bf16.msra.mxu1 %v3331_v36 }
 0x37f   :  { %740 = vst [vmem:[#allocation3 + $0x1c] sm:$0xff] %v728_v20  ;;  %3058 = vmatprep.subr.bf16.mxu1 %v3773_v38 }
 0x380   :  { %v2996_v21 = vpop.f32.mrf.mxu0 }
 0x381   :  { %813 = vst [vmem:[#allocation4 + $0x24] sm:$0xf] %v2996_v21 }
 0x382   :  { %v797_v22 = vpop.f32.mrf.mxu0  ;;  %v816_v25 = vld [vmem:[#allocation3 + $0x10] sm:$0xff]  ;;  %3059 = vmatpush3.bf16.msra.mxu1 %v3332_v39 }
 0x383   :  { %811 = vst [vmem:[#allocation4 + $0x14] sm:$0xff] %v797_v22  ;;  %3060 = vmatprep.subr.bf16.mxu1 %v3773_v38 }
 0x384   :  { %v2997_v23 = vpop.f32.mrf.mxu0 }
 0x386   :  { %v800_v24 = vpop.f32.mrf.mxu0  ;;  %v817_v26 = vld [vmem:[#allocation3 + $0x18] sm:$0xff]  ;;  %v818_v28 = vld [vmem:[#allocation3 + $0x20] sm:$0xff]  ;;  %3061 = vmatpush3.bf16.msra.mxu1 %v3333_v40 }
 0x387   :  { %812 = vst [vmem:[#allocation4 + $0x1c] sm:$0xff] %v800_v24  ;;  %v836_v27 = vpack.c.bf16 %v817_v26, %v816_v25  ;;  %v837_v32 = vpack.c.bf16 %v818_v28, %v818_v28  ;;  %3062 = vmatprep.subr.bf16.mxu1 %v3773_v38 }
 0x389   :  { %3047 = vmatmul.mubr.bf16.gmra.mxu0 %v836_v27 }
 0x38a   :  { %3050 = vmatprep.mubr.msk.bf16.mxu0 %vm3775_vm11, %v3773_v38  ;;  %v840_v29 = vld [vmem:[#allocation4 + $0x10] sm:$0xff]  ;;  %3063 = vmatpush3.bf16.msra.mxu1 %v3334_v41 }
 0x38b   :  { %3064 = vmatprep.subr.bf16.mxu1 %v3773_v38 }
 0x38e   :  { %v841_v30 = vld [vmem:[#allocation4 + $0x18] sm:$0xff]  ;;  %v842_v33 = vld [vmem:[#allocation4 + $0x20] sm:$0xff]  ;;  %3065 = vmatpush3.bf16.msra.mxu1 %v3335_v42 }
 0x38f   :  { %v860_v31 = vpack.c.bf16 %v841_v30, %v840_v29  ;;  %v861_v34 = vpack.c.bf16 %v842_v33, %v842_v33  ;;  %3066 = vmatprep.subr.bf16.mxu1 %v3773_v38 }
 0x391   :  { %3019 = vmatmul.mubr.bf16.gmra.mxu1 %v860_v31  ;;  %3051 = vmatmul.mubr.bf16.gmra.mxu0 %v837_v32 }
 0x392   :  { %3022 = vmatprep.mubr.msk.bf16.mxu1 %vm3775_vm11, %v3773_v38  ;;  %3086 = vmatprep.mubr.msk.bf16.mxu0 %vm3775_vm11, %v3773_v38 }
 0x393   :  { %3067 = vmatpush3.bf16.msra.mxu1 %v3336_v43 }
 0x394   :  { %3068 = vmatprep.subr.bf16.mxu1 %v3773_v38 }
 0x397   :  { %3069 = vmatpush3.bf16.msra.mxu1 %v3337_v44 }
 0x398   :  { %3098 = vmatprep.subr.bf16.mxu1 %v3773_v38 }
 0x399   :  { %3023 = vmatmul.mubr.bf16.gmra.mxu1 %v861_v34 }
 0x39a   :  { %3070 = vmatprep.mubr.msk.bf16.mxu1 %vm3775_vm11, %v3773_v38 }
 0x431   :  { %v1048_v45 = vpop.f32.mrf.mxu0 }
 0x433   :  { %v3044_v46 = vpop.f32.mrf.mxu0 }
 0x434   :  { %v3338_v46 = vld [vmem:[#allocation19 + $0x38] sm:$0xff]  }
 0x435   :  { %v1051_v47 = vpop.f32.mrf.mxu0 }
 0x437   :  { %v3045_v48 = vpop.f32.mrf.mxu0 }
 0x439   :  { %v944_v49 = vpop.f32.mrf.mxu1 }
 0x43a   :  { %v1049_v51 = vadd.f32 %v1048_v45, %v944_v49  ;;  %v3340_v49 = vld [vmem:[#allocation19 + $0x28] sm:$0xff]  }
 0x43b   :  { %v3016_v52 = vpop.f32.mrf.mxu1 }
 0x43c   :  { %v1077_v53 = vadd.f32 %v2706_v50, %v1049_v51 }
 0x43d   :  { %v947_v54 = vpop.f32.mrf.mxu1 }
 0x43e   :  { %v1087_v55 = vmin.f32 %v1077_v53, 0.0  ;;  %v1052_v56 = vadd.f32 %v1051_v47, %v947_v54  ;;  %vm1082_vm12 = vcmp.gt.f32.partialorder %v1077_v53, 0.0  ;;  %v3339_v47 = vld [vmem:[#allocation19 + $0x30] sm:$0xff]  }
 0x43f   :  { %v3017_v57 = vpop.f32.mrf.mxu1 }
 0x440   :  { %v1092_v58 = vmul.f32 1.442695, %v1087_v55  ;;  %v1078_v59 = vadd.f32 %v2706_v50, %v1052_v56 }
 0x442   :  { %3408 = vpow2.f32 %v1092_v58  ;;  %v1088_v60 = vmin.f32 %v1078_v59, 0.0  ;;  %vm1083_vm13 = vcmp.gt.f32.partialorder %v1078_v59, 0.0 }
 0x444   :  { %v1094_v61 = vmul.f32 1.442695, %v1088_v60 }
 0x446   :  { %3410 = vpow2.f32 %v1094_v61 }
 0x449   :  { %v1056_v62 = vpop.f32.mrf.mxu0 }
 0x44b   :  { %v3048_v63 = vpop.f32.mrf.mxu0 }
 0x44d   :  { %v1059_v0 = vpop.f32.mrf.mxu0 }
 0x44f   :  { %v3409_v1 = vpop.eup %3408  ;;  %v3049_v2 = vpop.f32.mrf.mxu0 }
 0x450   :  { %v2707_v5 = vadd.f32 -1.0, %v3409_v1 }
 0x451   :  { %v952_v3 = vpop.f32.mrf.mxu1  ;;  %v1064_v4 = vpop.f32.mrf.mxu0 }
 0x452   :  { %v1057_v6 = vadd.f32 %v1056_v62, %v952_v3  ;;  %v1107_v14 = vsel %vm1082_vm12, %v1077_v53, %v2707_v5  ;;  %v2712_v53 = vld [vmem:[%s4255_s12] ss:$0 sm:$0xff] }
 0x453   :  { %v3411_v7 = vpop.eup %3410  ;;  %v3020_v8 = vpop.f32.mrf.mxu1 }
 0x454   :  { %v3052_v9 = vpop.f32.mrf.mxu0  ;;  %v2708_v10 = vadd.f32 -1.0, %v3411_v7  ;;  %v1079_v11 = vadd.f32 %v2706_v50, %v1057_v6 }
 0x455   :  { %v955_v12 = vpop.f32.mrf.mxu1 }
 0x456   :  { %v1067_v13 = vpop.f32.mrf.mxu0  ;;  %v1108_v15 = vsel %vm1083_vm13, %v1078_v59, %v2708_v10  ;;  %v1089_v16 = vmin.f32 %v1079_v11, 0.0  ;;  %v1060_v17 = vadd.f32 %v1059_v0, %v955_v12  ;;  %vm1084_vm14 = vcmp.gt.f32.partialorder %v1079_v11, 0.0 }
 0x457   :  { %v1128_v18 = vpack.c.bf16 %v1108_v15, %v1107_v14  ;;  %v3021_v19 = vpop.f32.mrf.mxu1 }
 0x458   :  { %v3053_v20 = vpop.f32.mrf.mxu0  ;;  %v1096_v21 = vmul.f32 1.442695, %v1089_v16  ;;  %v1080_v22 = vadd.f32 %v2706_v50, %v1060_v17 }
 0x459   :  { %v960_v23 = vpop.f32.mrf.mxu1  ;;  %3071 = vmatmul.mubr.bf16.vlgmr.msra.gmra.mxu1 %v1128_v18 }
 0x45a   :  { %3412 = vpow2.f32 %v1096_v21  ;;  %v1090_v24 = vmin.f32 %v1080_v22, 0.0  ;;  %v1065_v25 = vadd.f32 %v1064_v4, %v960_v23  ;;  %3074 = vmatprep.mubr.msk.bf16.mxu1 %vm3775_vm11, %v3773_v38  ;;  %vm1085_vm15 = vcmp.gt.f32.partialorder %v1080_v22, 0.0  ;;  %3099 = vmatpush3.bf16.msra.mxu1 %v3338_v46 }
 0x45b   :  { %v3024_v26 = vpop.f32.mrf.mxu1  ;;  %3100 = vmatprep.subr.bf16.mxu1 %v3773_v38 }
 0x45c   :  { %v1098_v27 = vmul.f32 1.442695, %v1090_v24  ;;  %v1081_v28 = vadd.f32 %v2706_v50, %v1065_v25 }
 0x45d   :  { %v963_v29 = vpop.f32.mrf.mxu1 }
 0x45e   :  { %3414 = vpow2.f32 %v1098_v27  ;;  %v1091_v30 = vmin.f32 %v1081_v28, 0.0  ;;  %vm1086_vm0 = vcmp.gt.f32.partialorder %v1081_v28, 0.0  ;;  %3101 = vmatpush3.bf16.msra.mxu1 %v3339_v47 }
 0x45f   :  { %v3025_v31 = vpop.f32.mrf.mxu1  ;;  %3102 = vmatprep.subr.bf16.mxu1 %v3773_v38 }
 0x460   :  { %v1100_v32 = vmul.f32 1.442695, %v1091_v30 }
 0x462   :  { %3416 = vpow2.f32 %v1100_v32  ;;  %3103 = vmatpush3.bf16.msra.mxu1 %v3340_v49 }
 0x463   :  { %3104 = vmatprep.subr.bf16.mxu1 %v3773_v38 }
 0x467   :  { %v3413_v33 = vpop.eup %3412 }
 0x468   :  { %v2709_v34 = vadd.f32 -1.0, %v3413_v33 }
 0x46a   :  { %v1109_v39 = vsel %vm1084_vm14, %v1079_v11, %v2709_v34 }
 0x46b   :  { %v3415_v35 = vpop.eup %3414 }
 0x46c   :  { %v2710_v36 = vadd.f32 -1.0, %v3415_v35 }
 0x46e   :  { %v1110_v40 = vsel %vm1085_vm15, %v1080_v22, %v2710_v36 }
 0x46f   :  { %v3417_v41 = vpop.eup %3416  ;;  %v1129_v42 = vpack.c.bf16 %v1110_v40, %v1109_v39 }
 0x470   :  { %v2711_v43 = vadd.f32 -1.0, %v3417_v41 }
 0x471   :  { %3075 = vmatmul.mubr.bf16.gmra.mxu1 %v1129_v42 }
 0x472   :  { %3078 = vmatprep.mubr.msk.bf16.mxu1 %vm3775_vm11, %v3773_v38  ;;  %v1111_v44 = vsel %vm1086_vm0, %v1081_v28, %v2711_v43 }
 0x473   :  { %v1130_v45 = vpack.c.bf16 %v1111_v44, %v1111_v44 }
 0x479   :  { %3079 = vmatmul.mubr.bf16.gmra.mxu1 %v1130_v45 }
 0x47a   :  { %3114 = vmatprep.mubr.msk.bf16.mxu1 %vm3775_vm11, %v3773_v38 }
 0x519   :  { %v1220_v48 = vpop.f32.mrf.mxu1 }
 0x51a   :  { %v1221_v55 = vadd.f32 %v2712_v53, %v1220_v48 }
 0x51b   :  { %v3072_v50 = vpop.f32.mrf.mxu1 }
 0x51c   :  { %v1247_v57 = vmin.f32 %v1221_v55, 0.0  ;;  %vm1242_vm2 = vcmp.gt.f32.partialorder %v1221_v55, 0.0 }
 0x51d   :  { %v1223_v51 = vpop.f32.mrf.mxu1 }
 0x51e   :  { %v1224_v54 = vadd.f32 %v2712_v53, %v1223_v51  ;;  %v1252_v59 = vmul.f32 1.442695, %v1247_v57 }
 0x51f   :  { %v3073_v52 = vpop.f32.mrf.mxu1 }
 0x520   :  { %v1248_v56 = vmin.f32 %v1224_v54, 0.0  ;;  %vm1243_vm1 = vcmp.gt.f32.partialorder %v1224_v54, 0.0 }
 0x522   :  { %v1254_v58 = vmul.f32 1.442695, %v1248_v56 }
 0x524   :  { %3418 = vpow2.f32 %v1254_v58 }
 0x525   :  { %3420 = vpow2.f32 %v1252_v59 }
 0x531   :  { %v1228_v60 = vpop.f32.mrf.mxu1  ;;  %v3419_v12 = vpop.eup %3418 }
 0x532   :  { %v1229_v61 = vadd.f32 %v2712_v53, %v1228_v60  ;;  %v3421_v14 = vpop.eup %3420  ;;  %v2722_v15 = vadd.f32 -1.0, %v3419_v12 }
 0x533   :  { %v3076_v62 = vpop.f32.mrf.mxu1  ;;  %v2721_v16 = vadd.f32 -1.0, %v3421_v14 }
 0x534   :  { %v1249_v63 = vmin.f32 %v1229_v61, 0.0  ;;  %v1268_v18 = vsel %vm1243_vm1, %v1224_v54, %v2722_v15  ;;  %vm1244_vm3 = vcmp.gt.f32.partialorder %v1229_v61, 0.0  ;;  %v1320_v15 = vld [vmem:[#allocation7] sm:$0x7] }
 0x535   :  { %v1231_v0 = vpop.f32.mrf.mxu1  ;;  %v1267_v20 = vsel %vm1242_vm2, %v1221_v55, %v2721_v16  ;;  %v1285_v23 = vmul.f32 %v1268_v18, %v1268_v18 }
 0x536   :  { %v1256_v1 = vmul.f32 1.442695, %v1249_v63  ;;  %v1232_v2 = vadd.f32 %v2712_v53, %v1231_v0  ;;  %v1284_v25 = vmul.f32 %v1267_v20, %v1267_v20  ;;  %v1272_v26 = vadd.f32 %v1268_v18, %v1267_v20 }
 0x537   :  { %v3077_v3 = vpop.f32.mrf.mxu1 }
 0x538   :  { %3422 = vpow2.f32 %v1256_v1  ;;  %v1250_v4 = vmin.f32 %v1232_v2, 0.0  ;;  %vm1245_vm4 = vcmp.gt.f32.partialorder %v1232_v2, 0.0  ;;  %v1289_v30 = vadd.f32 %v1285_v23, %v1284_v25  ;;  %v3343_v23 = vld [vmem:[#allocation19 + $0x10] sm:$0xff]   ;;  %v3345_v25 = vld [vmem:[#allocation19] sm:$0xff]  }
 0x539   :  { %v1236_v5 = vpop.f32.mrf.mxu1 }
 0x53a   :  { %v1258_v6 = vmul.f32 1.442695, %v1250_v4  ;;  %v1237_v7 = vadd.f32 %v2712_v53, %v1236_v5 }
 0x53b   :  { %v3080_v8 = vpop.f32.mrf.mxu1 }
 0x53c   :  { %3424 = vpow2.f32 %v1258_v6  ;;  %v1251_v9 = vmin.f32 %v1237_v7, 0.0  ;;  %vm1246_vm6 = vcmp.gt.f32.partialorder %v1237_v7, 0.0 }
 0x53d   :  { %v1239_v10 = vpop.f32.mrf.mxu1 }
 0x53e   :  { %v1260_v11 = vmul.f32 1.442695, %v1251_v9 }
 0x53f   :  { %v3081_v13 = vpop.f32.mrf.mxu1 }
 0x540   :  { %3426 = vpow2.f32 %v1260_v11 }
 0x545   :  { %v3423_v17 = vpop.eup %3422 }
 0x546   :  { %v2723_v19 = vadd.f32 -1.0, %v3423_v17 }
 0x548   :  { %v1269_v21 = vsel %vm1244_vm3, %v1229_v61, %v2723_v19 }
 0x549   :  { %v3425_v22 = vpop.eup %3424  ;;  %v1286_v27 = vmul.f32 %v1269_v21, %v1269_v21  ;;  %v1273_v31 = vadd.f32 %v1272_v26, %v1269_v21  ;;  %v3346_v26 = vld [vmem:[#allocation21 + $0x38] sm:$0xff]  }
 0x54a   :  { %v2724_v24 = vadd.f32 -1.0, %v3425_v22  ;;  %v3342_v22 = vld [vmem:[#allocation19 + $0x18] sm:$0xff]  }
 0x54b   :  { %v1290_v34 = vadd.f32 %v1289_v30, %v1286_v27 }
 0x54c   :  { %v1270_v28 = vsel %vm1245_vm4, %v1232_v2, %v2724_v24  ;;  %v3344_v24 = vld [vmem:[#allocation19 + $0x8] sm:$0xff]  }
 0x54d   :  { %v3427_v29 = vpop.eup %3426  ;;  %v1287_v32 = vmul.f32 %v1270_v28, %v1270_v28  ;;  %v1274_v35 = vadd.f32 %v1273_v31, %v1270_v28 }
 0x54e   :  { %v2725_v33 = vadd.f32 -1.0, %v3427_v29 }
 0x54f   :  { %v1291_v39 = vadd.f32 %v1290_v34, %v1287_v32 }
 0x550   :  { %v1271_v36 = vsel %vm1246_vm6, %v1237_v7, %v2725_v33 }
 0x551   :  { %v1275_v40 = vadd.f32 %v1274_v35, %v1271_v36  ;;  %v1288_v41 = vmul.f32 %v1271_v36, %v1271_v36 }
 0x553   :  { %v1276_v42 = vrot.slane %v1275_v40, 4  ;;  %v1292_v43 = vadd.f32 %v1291_v39, %v1288_v41  ;;  %v3348_v41 = vld [vmem:[#allocation21 + $0x28] sm:$0xff]  }
 0x555   :  { %v1277_v44 = vadd.f32 %v1276_v42, %v1275_v40  ;;  %v1293_v45 = vrot.slane %v1292_v43, 4  ;;  %v3347_v40 = vld [vmem:[#allocation21 + $0x30] sm:$0xff]   ;;  %v3349_v42 = vld [vmem:[#allocation21 + $0x20] sm:$0xff]  }
 0x557   :  { %v1278_v46 = vrot.slane %v1277_v44, 2  ;;  %v1294_v47 = vadd.f32 %v1293_v45, %v1292_v43  ;;  %v3350_v43 = vld [vmem:[#allocation21 + $0x18] sm:$0xff]   ;;  %v3352_v45 = vld [vmem:[#allocation21 + $0x8] sm:$0xff]  }
 0x559   :  { %v1279_v48 = vadd.f32 %v1278_v46, %v1277_v44  ;;  %v1295_v49 = vrot.slane %v1294_v47, 2  ;;  %v3351_v44 = vld [vmem:[#allocation21 + $0x10] sm:$0xff]   ;;  %v3353_v46 = vld [vmem:[#allocation21] sm:$0xff]  }
 0x55b   :  { %v1280_v50 = vrot.slane %v1279_v48, 1  ;;  %v1296_v51 = vadd.f32 %v1295_v49, %v1294_v47  ;;  %v2728_v47 = vld [vmem:[%s4257_s14] ss:$0 sm:$0xff] }
 0x55d   :  { %v1281_v52 = vadd.f32 %v1280_v50, %v1279_v48  ;;  %v1297_v53 = vrot.slane %v1296_v51, 1 }
 0x55f   :  { %v1283_v54 = vmul.f32 0.025, %v1281_v52  ;;  %v1298_v55 = vadd.f32 %v1297_v53, %v1296_v51 }
 0x561   :  { %v1299_v56 = vmul.f32 0.025, %v1298_v55  ;;  %v1300_v57 = vmul.f32 %v1283_v54, %v1283_v54  ;;  %v1303_v61 = vsub.f32 %v1267_v20, %v1283_v54  ;;  %v1304_v62 = vsub.f32 %v1268_v18, %v1283_v54  ;;  %v1374_v20 = vld [vmem:[#allocation7] sm:$0x7] }
 0x562   :  { %v1305_v63 = vsub.f32 %v1269_v21, %v1283_v54  ;;  %v1306_v0 = vsub.f32 %v1270_v28, %v1283_v54  ;;  %v1307_v2 = vsub.f32 %v1271_v36, %v1283_v54  ;;  %v3341_v21 = vld [vmem:[#allocation19 + $0x20] sm:$0xff]  }
 0x563   :  { %v1301_v58 = vsub.f32 %v1299_v56, %v1300_v57  ;;  %3105 = vmatpush3.bf16.msra.mxu1 %v3341_v21 }
 0x564   :  { %3106 = vmatprep.subr.bf16.mxu1 %v3773_v38 }
 0x565   :  { %v1302_v59 = vmax.f32 %v1301_v58, 0.0 }
 0x567   :  { %v1308_v60 = vadd.f32 1e-05, %v1302_v59  ;;  %3107 = vmatpush3.bf16.msra.mxu1 %v3342_v22 }
 0x568   :  { %3108 = vmatprep.subr.bf16.mxu1 %v3773_v38 }
 0x569   :  { %3428 = vrsqrt.f32 %v1308_v60 }
 0x56b   :  { %3109 = vmatpush3.bf16.msra.mxu1 %v3343_v23 }
 0x56c   :  { %3110 = vmatprep.subr.bf16.mxu1 %v3773_v38 }
 0x56f   :  { %3111 = vmatpush3.bf16.msra.mxu1 %v3344_v24 }
 0x570   :  { %3112 = vmatprep.subr.bf16.mxu1 %v3773_v38 }
 0x573   :  { %3113 = vmatpush3.bf16.msra.mxu1 %v3345_v25 }
 0x576   :  { %v3429_v1 = vpop.eup %3428 }
 0x577   :  { %v1310_v3 = vmul.f32 %v3429_v1, %v1303_v61  ;;  %v1311_v4 = vmul.f32 %v3429_v1, %v1304_v62  ;;  %v4095_v5 = vmul.f32 %v3429_v1, %v1305_v63  ;;  %v4097_v6 = vmul.f32 %v3429_v1, %v1306_v0 }
 0x578   :  { %v4099_v7 = vmul.f32 %v3429_v1, %v1307_v2  ;;  %v3354_v1 = vld [vmem:[%s4284_s29] sm:$0xff]  }
 0x579   :  { %1317 = vst [vmem:[#allocation5 + $0x10] sm:$0xff] %v4095_v5  ;;  %1318 = vst [vmem:[#allocation5 + $0x18] sm:$0xff] %v4097_v6  ;;  %v2271_v8 = vpack.c.bf16 %v4097_v6, %v4095_v5  ;;  %v4108_v13 = vpack.c.bf16 %v1311_v4, %v1310_v3  ;;  %v3355_v2 = vld [vmem:[%s4285_s30] sm:$0xff]   ;;  %v3389_v5 = vld [vmem:[#allocation27 + $0x20] sm:$0xff]  }
 0x57a   :  { %1319 = vst [vmem:[#allocation5 + $0x20] sm:$0xff] %v4099_v7  ;;  %v2739_v3 = vld [vmem:[%s4259_s16] ss:$0 sm:$0xff]  ;;  %v3390_v6 = vld [vmem:[#allocation27 + $0x18] sm:$0xff]  }
 0x580   :  { %v1323_v9 = vld [vmem:[#allocation5 + $0x10] sm:$0xf]  ;;  %v1375_v17 = vld [vmem:[#allocation5 + $0x14] sm:$0xff] }
 0x581   :  { %v1325_v10 = vpack.c.bf16 %v1323_v9, %v1323_v9  ;;  %v1377_v12 = vld [vmem:[#allocation5 + $0x24] sm:$0xf]  ;;  %v1376_v18 = vld [vmem:[#allocation5 + $0x1c] sm:$0xff] }
 0x582   :  { %v1379_v14 = vpack.c.bf16 %v1377_v12, %v1377_v12  ;;  %v1378_v19 = vpack.c.bf16 %v1376_v18, %v1375_v17 }
 0x583   :  { %v1331_v11 = vsel %vm538_vm9, %v1325_v10, 0 }
 0x584   :  { %3083 = vmatpush3.bf16.msra.mxu0 %v1331_v11  ;;  %v1384_v16 = vsel %vm538_vm9, %v1379_v14, 0 }
 0x585   :  { %3084 = vmatprep.subr.bf16.mxu0 %v3773_v38 }
 0x588   :  { %3085 = vmatpush3.bf16.msra.mxu0 %v4108_v13 }
 0x589   :  { %3090 = vmatprep.subr.bf16.mxu0 %v3773_v38 }
 0x58b   :  { %3087 = vmatmul.mubr.msk.bf16.vlgmr.msra.gmra.mxu0 %vm1326_vm7, %v1320_v15 }
 0x58c   :  { %3091 = vmatpush3.bf16.msra.mxu0 %v1384_v16  ;;  %3094 = vmatprep.mubr.msk.bf16.mxu0 %vm3775_vm11, %v3773_v38 }
 0x58d   :  { %3092 = vmatprep.subr.bf16.mxu0 %v3773_v38 }
 0x590   :  { %3093 = vmatpush3.bf16.msra.mxu0 %v1378_v19 }
 0x591   :  { %3118 = vmatprep.subr.bf16.mxu0 %v3773_v38 }
 0x593   :  { %3095 = vmatmul.mubr.msk.bf16.vlgmr.msra.gmra.mxu0 %vm1326_vm7, %v1374_v20 }
 0x594   :  { %3134 = vmatprep.mubr.msk.bf16.mxu0 %vm3775_vm11, %v3773_v38  ;;  %3119 = vmatpush3.bf16.msra.mxu0 %v3346_v26 }
 0x595   :  { %3120 = vmatprep.subr.bf16.mxu0 %v3773_v38 }
 0x598   :  { %3121 = vmatpush3.bf16.msra.mxu0 %v3347_v40 }
 0x599   :  { %3122 = vmatprep.subr.bf16.mxu0 %v3773_v38 }
 0x59c   :  { %3123 = vmatpush3.bf16.msra.mxu0 %v3348_v41 }
 0x59d   :  { %3124 = vmatprep.subr.bf16.mxu0 %v3773_v38 }
 0x5a0   :  { %3125 = vmatpush3.bf16.msra.mxu0 %v3349_v42 }
 0x5a1   :  { %3126 = vmatprep.subr.bf16.mxu0 %v3773_v38 }
 0x5a4   :  { %3127 = vmatpush3.bf16.msra.mxu0 %v3350_v43 }
 0x5a5   :  { %3128 = vmatprep.subr.bf16.mxu0 %v3773_v38 }
 0x5a8   :  { %3129 = vmatpush3.bf16.msra.mxu0 %v3351_v44 }
 0x5a9   :  { %3130 = vmatprep.subr.bf16.mxu0 %v3773_v38 }
 0x5ac   :  { %3131 = vmatpush3.bf16.msra.mxu0 %v3352_v45 }
 0x5ad   :  { %3132 = vmatprep.subr.bf16.mxu0 %v3773_v38 }
 0x5b0   :  { %3133 = vmatpush3.bf16.msra.mxu0 %v3353_v46 }
 0x64b   :  { %v1367_v27 = vpop.f32.mrf.mxu0 }
 0x64c   :  { %1373 = vst [vmem:[#allocation6] sm:$0x1f] %v1367_v27 }
 0x64d   :  { %v3088_v28 = vpop.f32.mrf.mxu0 }
 0x64f   :  { %v1370_v29 = vpop.f32.mrf.mxu0 }
 0x651   :  { %v3089_v30 = vpop.f32.mrf.mxu0 }
 0x653   :  { %v1420_v31 = vpop.f32.mrf.mxu0 }
 0x654   :  { %1426 = vst [vmem:[#allocation6 + $0x5] sm:$0x1f] %v1420_v31 }
 0x655   :  { %v3096_v32 = vpop.f32.mrf.mxu0 }
 0x657   :  { %v1423_v33 = vpop.f32.mrf.mxu0 }
 0x659   :  { %v3097_v34 = vpop.f32.mrf.mxu0 }
 0x65b   :  { %v1427_v35 = vld [vmem:[#allocation6] sm:$0xff]  ;;  %v1428_v36 = vld [vmem:[#allocation6 + $0x8] sm:$0x3] }
 0x65c   :  { %v1445_v39 = vpack.c.bf16 %v1428_v36, %v1427_v35 }
 0x65e   :  { %3115 = vmatmul.mubr.bf16.vlgmr.msra.gmra.mxu1 %v1445_v39 }
 0x65f   :  { %3140 = vmatprep.mubr.msk.bf16.mxu1 %vm531_vm5, %v3354_v1  ;;  %v3360_v1 = vld [vmem:[%s4284_s29 + $0x8] ss:$0 sps:$4 sm:$0x33]  }
 0x71e   :  { %v1535_v48 = vpop.f32.mrf.mxu1 }
 0x71f   :  { %v1536_v49 = vadd.f32 %v2728_v47, %v1535_v48 }
 0x720   :  { %v3116_v50 = vpop.f32.mrf.mxu1 }
 0x721   :  { %v1544_v51 = vmin.f32 %v1536_v49, 0.0  ;;  %vm1542_vm8 = vcmp.gt.f32.partialorder %v1536_v49, 0.0 }
 0x722   :  { %v1538_v52 = vpop.f32.mrf.mxu1 }
 0x723   :  { %v1546_v53 = vmul.f32 1.442695, %v1544_v51  ;;  %v1539_v54 = vadd.f32 %v2728_v47, %v1538_v52 }
 0x724   :  { %v3117_v55 = vpop.f32.mrf.mxu1 }
 0x725   :  { %3430 = vpow2.f32 %v1546_v53  ;;  %v1545_v56 = vmin.f32 %v1539_v54, 0.0  ;;  %vm1543_vm10 = vcmp.gt.f32.partialorder %v1539_v54, 0.0 }
 0x727   :  { %v1548_v57 = vmul.f32 1.442695, %v1545_v56 }
 0x729   :  { %3432 = vpow2.f32 %v1548_v57 }
 0x732   :  { %v3431_v58 = vpop.eup %3430 }
 0x733   :  { %v2737_v59 = vadd.f32 -1.0, %v3431_v58 }
 0x735   :  { %v1552_v62 = vsel %vm1542_vm8, %v1536_v49, %v2737_v59 }
 0x736   :  { %v3433_v60 = vpop.eup %3432 }
 0x737   :  { %v2738_v61 = vadd.f32 -1.0, %v3433_v60 }
 0x739   :  { %v1553_v63 = vsel %vm1543_vm10, %v1539_v54, %v2738_v61 }
 0x73a   :  { %v1570_v0 = vpack.c.bf16 %v1553_v63, %v1552_v62  ;;  %v3356_v62 = vld [vmem:[%s4284_s29 + $0x8] ss:$0 sps:$4 sm:$0x33]  }
 0x73b   :  { %v3357_v63 = vld [vmem:[%s4285_s30 + $0x8] ss:$0 sps:$4 sm:$0x33]  }
 0x73c   :  { %3135 = vmatmul.mubr.bf16.vlgmr.msra.gmra.mxu0 %v1570_v0  ;;  %v3358_v0 = vld [vmem:[%s4284_s29] sm:$0xff]  }
 0x73d   :  { %3146 = vmatprep.mubr.msk.bf16.mxu0 %vm531_vm5, %v3355_v2  ;;  %v3361_v2 = vld [vmem:[%s4285_s30 + $0x8] ss:$0 sps:$4 sm:$0x33]  }
 0x7fc   :  { %v1660_v4 = vpop.f32.mrf.mxu0 }
 0x7fd   :  { %v1661_v9 = vadd.f32 %v2739_v3, %v1660_v4  ;;  %v3363_v4 = vld [vmem:[#allocation22 + $0x38] sm:$0xff]  }
 0x7fe   :  { %v3136_v10 = vpop.f32.mrf.mxu0 }
 0x7ff   :  { %v1669_v11 = vmin.f32 %v1661_v9, 0.0  ;;  %vm1667_vm12 = vcmp.gt.f32.partialorder %v1661_v9, 0.0  ;;  %v3365_v10 = vld [vmem:[#allocation22 + $0x30] sm:$0xff]  }
 0x800   :  { %v1663_v12 = vpop.f32.mrf.mxu0 }
 0x801   :  { %v1671_v14 = vmul.f32 1.442695, %v1669_v11  ;;  %v1664_v15 = vadd.f32 %v2739_v3, %v1663_v12  ;;  %v3362_v3 = vld [vmem:[#allocation24 + $0x38] sm:$0xff]   ;;  %v3366_v11 = vld [vmem:[#allocation24 + $0x28] sm:$0xff]  }
 0x802   :  { %v3137_v16 = vpop.f32.mrf.mxu0  ;;  %v3367_v12 = vld [vmem:[#allocation22 + $0x28] sm:$0xff]  }
 0x803   :  { %3434 = vpow2.f32 %v1671_v14  ;;  %v1670_v17 = vmin.f32 %v1664_v15, 0.0  ;;  %vm1668_vm13 = vcmp.gt.f32.partialorder %v1664_v15, 0.0  ;;  %v3368_v14 = vld [vmem:[#allocation24 + $0x20] sm:$0xff]   ;;  %v3370_v16 = vld [vmem:[#allocation24 + $0x18] sm:$0xff]  }
 0x805   :  { %v1673_v18 = vmul.f32 1.442695, %v1670_v17  ;;  %v3371_v17 = vld [vmem:[#allocation22 + $0x18] sm:$0xff]  }
 0x807   :  { %3436 = vpow2.f32 %v1673_v18  ;;  %v3372_v18 = vld [vmem:[#allocation24 + $0x10] sm:$0xff]  }
 0x810   :  { %v3435_v19 = vpop.eup %3434 }
 0x811   :  { %v2748_v20 = vadd.f32 -1.0, %v3435_v19  ;;  %v3373_v19 = vld [vmem:[#allocation22 + $0x10] sm:$0xff]  }
 0x813   :  { %v1677_v23 = vsel %vm1667_vm12, %v1661_v9, %v2748_v20  ;;  %v3364_v9 = vld [vmem:[#allocation24 + $0x30] sm:$0xff]   ;;  %v3374_v20 = vld [vmem:[#allocation24 + $0x8] sm:$0xff]  }
 0x814   :  { %v3437_v21 = vpop.eup %3436  ;;  %v1689_v27 = vmul.f32 %v1677_v23, %v1677_v23 }
 0x815   :  { %v2749_v22 = vadd.f32 -1.0, %v3437_v21  ;;  %v3375_v21 = vld [vmem:[#allocation22 + $0x8] sm:$0xff]  }
 0x817   :  { %v1678_v24 = vsel %vm1668_vm13, %v1664_v15, %v2749_v22  ;;  %v3369_v15 = vld [vmem:[#allocation22 + $0x20] sm:$0xff]  }
 0x818   :  { %v1679_v25 = vsel %vm538_vm9, %v1678_v24, 0.0  ;;  %v1690_v26 = vmul.f32 %v1678_v24, %v1678_v24  ;;  %v3376_v22 = vld [vmem:[#allocation24] sm:$0xff]  }
 0x819   :  { %v1680_v28 = vadd.f32 %v1679_v25, %v1677_v23 }
 0x81a   :  { %v1691_v29 = vsel %vm538_vm9, %v1690_v26, 0.0 }
 0x81b   :  { %v1681_v30 = vrot.slane %v1680_v28, 4  ;;  %v1692_v31 = vadd.f32 %v1691_v29, %v1689_v27 }
 0x81d   :  { %v1682_v32 = vadd.f32 %v1681_v30, %v1680_v28  ;;  %v1693_v33 = vrot.slane %v1692_v31, 4 }
 0x81f   :  { %v1683_v34 = vrot.slane %v1682_v32, 2  ;;  %v1694_v35 = vadd.f32 %v1693_v33, %v1692_v31 }
 0x821   :  { %v1684_v36 = vadd.f32 %v1683_v34, %v1682_v32  ;;  %v1695_v39 = vrot.slane %v1694_v35, 2  ;;  %v3378_v32 = vld [vmem:[#allocation25 + $0x38] sm:$0xff]  }
 0x823   :  { %v1685_v40 = vrot.slane %v1684_v36, 1  ;;  %v1696_v41 = vadd.f32 %v1695_v39, %v1694_v35 }
 0x825   :  { %v1686_v42 = vadd.f32 %v1685_v40, %v1684_v36  ;;  %v1697_v43 = vrot.slane %v1696_v41, 1 }
 0x827   :  { %v1688_v44 = vmul.f32 0.1, %v1686_v42  ;;  %v1698_v45 = vadd.f32 %v1697_v43, %v1696_v41  ;;  %v3379_v41 = vld [vmem:[#allocation25 + $0x30] sm:$0xff]  }
 0x829   :  { %v1699_v46 = vmul.f32 0.1, %v1698_v45  ;;  %v1700_v47 = vmul.f32 %v1688_v44, %v1688_v44  ;;  %v1703_v51 = vsub.f32 %v1677_v23, %v1688_v44  ;;  %v1704_v52 = vsub.f32 %v1678_v24, %v1688_v44  ;;  %v3377_v23 = vld [vmem:[#allocation22] sm:$0xff]  }
 0x82b   :  { %v1701_v48 = vsub.f32 %v1699_v46, %v1700_v47  ;;  %v3380_v46 = vld [vmem:[#allocation25 + $0x28] sm:$0xff]   ;;  %v3381_v47 = vld [vmem:[#allocation25 + $0x20] sm:$0xff]  }
 0x82d   :  { %v1702_v49 = vmax.f32 %v1701_v48, 0.0 }
 0x82f   :  { %v1705_v50 = vadd.f32 1e-05, %v1702_v49  ;;  %v3382_v49 = vld [vmem:[#allocation25 + $0x18] sm:$0xff]  }
 0x831   :  { %3438 = vrsqrt.f32 %v1705_v50 }
 0x83e   :  { %v3439_v53 = vpop.eup %3438 }
 0x83f   :  { %v1707_v54 = vmul.f32 %v3439_v53, %v1703_v51  ;;  %v1708_v55 = vmul.f32 %v3439_v53, %v1704_v52 }
 0x841   :  { %1709 = vst [vmem:[#allocation6] sm:$0xff] %v1707_v54  ;;  %1710 = vst [vmem:[#allocation6 + $0x8] sm:$0x3] %v1708_v55  ;;  %v3383_v55 = vld [vmem:[#allocation25 + $0x10] sm:$0xff]  }
 0x848   :  { %v1711_v56 = vld [vmem:[#allocation6] sm:$0x1f]  ;;  %v1852_v57 = vld [vmem:[#allocation6 + $0x5] sm:$0x1f] }
 0x849   :  { %v1715_v58 = vpack.c.bf16 %v1711_v56, %v1711_v56  ;;  %v1856_v59 = vpack.c.bf16 %v1852_v57, %v1852_v57 }
 0x84b   :  { %v1731_v60 = vand.u32 %v1715_v58, %v3989_v37  ;;  %v1872_v61 = vand.u32 %v1856_v59, %v3989_v37  ;;  %v3359_v37 = vld [vmem:[%s4285_s30] sm:$0xff]   ;;  %v3384_v59 = vld [vmem:[#allocation25 + $0x8] sm:$0xff]  }
 0x84d   :  { %3138 = vmatprep.subr.bf16.mxu1 %v1731_v60  ;;  %3144 = vmatprep.subr.bf16.mxu0 %v1731_v60 }
 0x84e   :  { %3139 = vmatpush3.bf16.msra.mxu1 %v1731_v60  ;;  %3145 = vmatpush3.bf16.msra.mxu0 %v1731_v60 }
 0x84f   :  { %3150 = vmatprep.subr.bf16.mxu1 %v1872_v61  ;;  %3156 = vmatprep.subr.bf16.mxu0 %v1872_v61 }
 0x851   :  { %3141 = vmatmul.mubr.msk.bf16.vlgmr.msra.gmra.mxu1 %vm531_vm5, %v3356_v62  ;;  %3147 = vmatmul.mubr.msk.bf16.vlgmr.msra.gmra.mxu0 %vm531_vm5, %v3357_v63  ;;  %v2272_v62 = vpack.c.bf16 %v4099_v7, %v4099_v7  ;;  %v3386_v63 = vld [vmem:[#allocation27 + $0x38] sm:$0xff]   ;;  %v3391_v7 = vld [vmem:[#allocation27 + $0x10] sm:$0xff]  }
 0x852   :  { %3151 = vmatpush3.bf16.msra.mxu1 %v1872_v61  ;;  %3157 = vmatpush3.bf16.msra.mxu0 %v1872_v61  ;;  %v3385_v61 = vld [vmem:[#allocation25] sm:$0xff]  }
 0x853   :  { %3152 = vmatprep.mubr.msk.bf16.mxu1 %vm531_vm5, %v3358_v0  ;;  %3158 = vmatprep.mubr.msk.bf16.mxu0 %vm531_vm5, %v3359_v37  ;;  %v3387_v0 = vld [vmem:[#allocation27 + $0x30] sm:$0xff]   ;;  %v3393_v37 = vld [vmem:[#allocation27] sm:$0xff]  }
 0x854   :  { %3162 = vmatprep.subr.bf16.mxu1 %v3773_v38  ;;  %3190 = vmatprep.subr.bf16.mxu0 %v3773_v38 }
 0x859   :  { %3153 = vmatmul.mubr.msk.bf16.vlgmr.msra.gmra.mxu1 %vm531_vm5, %v3360_v1  ;;  %3159 = vmatmul.mubr.msk.bf16.vlgmr.msra.gmra.mxu0 %vm531_vm5, %v3361_v2 }
 0x85a   :  { %3163 = vmatpush3.bf16.msra.mxu1 %v3362_v3  ;;  %3191 = vmatpush3.bf16.msra.mxu0 %v3363_v4 }
 0x85b   :  { %3164 = vmatprep.subr.bf16.mxu1 %v3773_v38  ;;  %3192 = vmatprep.subr.bf16.mxu0 %v3773_v38 }
 0x85c   :  { %3178 = vmatprep.mubr.msk.bf16.mxu1 %vm3775_vm11, %v3773_v38  ;;  %3206 = vmatprep.mubr.msk.bf16.mxu0 %vm3775_vm11, %v3773_v38 }
 0x85e   :  { %3165 = vmatpush3.bf16.msra.mxu1 %v3364_v9  ;;  %3193 = vmatpush3.bf16.msra.mxu0 %v3365_v10 }
 0x85f   :  { %3166 = vmatprep.subr.bf16.mxu1 %v3773_v38  ;;  %3194 = vmatprep.subr.bf16.mxu0 %v3773_v38 }
 0x862   :  { %3167 = vmatpush3.bf16.msra.mxu1 %v3366_v11  ;;  %3195 = vmatpush3.bf16.msra.mxu0 %v3367_v12 }
 0x863   :  { %3168 = vmatprep.subr.bf16.mxu1 %v3773_v38  ;;  %3196 = vmatprep.subr.bf16.mxu0 %v3773_v38 }
 0x866   :  { %3169 = vmatpush3.bf16.msra.mxu1 %v3368_v14  ;;  %3197 = vmatpush3.bf16.msra.mxu0 %v3369_v15 }
 0x867   :  { %3170 = vmatprep.subr.bf16.mxu1 %v3773_v38  ;;  %3198 = vmatprep.subr.bf16.mxu0 %v3773_v38 }
 0x86a   :  { %3171 = vmatpush3.bf16.msra.mxu1 %v3370_v16  ;;  %3199 = vmatpush3.bf16.msra.mxu0 %v3371_v17 }
 0x86b   :  { %3172 = vmatprep.subr.bf16.mxu1 %v3773_v38  ;;  %3200 = vmatprep.subr.bf16.mxu0 %v3773_v38 }
 0x86e   :  { %3173 = vmatpush3.bf16.msra.mxu1 %v3372_v18  ;;  %3201 = vmatpush3.bf16.msra.mxu0 %v3373_v19 }
 0x86f   :  { %3174 = vmatprep.subr.bf16.mxu1 %v3773_v38  ;;  %3202 = vmatprep.subr.bf16.mxu0 %v3773_v38 }
 0x872   :  { %3175 = vmatpush3.bf16.msra.mxu1 %v3374_v20  ;;  %3203 = vmatpush3.bf16.msra.mxu0 %v3375_v21 }
 0x873   :  { %3176 = vmatprep.subr.bf16.mxu1 %v3773_v38  ;;  %3204 = vmatprep.subr.bf16.mxu0 %v3773_v38 }
 0x876   :  { %3177 = vmatpush3.bf16.msra.mxu1 %v3376_v22  ;;  %3205 = vmatpush3.bf16.msra.mxu0 %v3377_v23 }
 0x877   :  { %3218 = vmatprep.subr.bf16.mxu1 %v3773_v38  ;;  %3246 = vmatprep.subr.bf16.mxu0 %v3773_v38 }
 0x911   :  { %v3142_v24 = vpop.f32.mrf.mxu1  ;;  %v3148_v25 = vpop.f32.mrf.mxu0 }
 0x912   :  { %1783 = vst [vmem:[#allocation3 + $0x10] sm:$0xf] %v3142_v24  ;;  %1851 = vst [vmem:[#allocation4 + $0x10] sm:$0xf] %v3148_v25 }
 0x913   :  { %v1767_v26 = vpop.f32.mrf.mxu1  ;;  %v1835_v27 = vpop.f32.mrf.mxu0 }
 0x915   :  { %v3143_v28 = vpop.f32.mrf.mxu1  ;;  %v3149_v29 = vpop.f32.mrf.mxu0 }
 0x917   :  { %v1770_v30 = vpop.f32.mrf.mxu1  ;;  %v1838_v31 = vpop.f32.mrf.mxu0 }
 0x918   :  { %v2038_v33 = vpack.c.bf16 %v1838_v31, %v1835_v27  ;;  %v2014_v34 = vpack.c.bf16 %v1770_v30, %v1767_v26 }
 0x919   :  { %v3154_v35 = vpop.f32.mrf.mxu1  ;;  %v3160_v36 = vpop.f32.mrf.mxu0 }
 0x91a   :  { %1924 = vst [vmem:[#allocation3 + $0x24] sm:$0xf] %v3154_v35  ;;  %1992 = vst [vmem:[#allocation4 + $0x24] sm:$0xf] %v3160_v36  ;;  %3179 = vmatmul.mubr.bf16.vlgmr.msra.gmra.mxu1 %v2038_v33  ;;  %3207 = vmatmul.mubr.bf16.vlgmr.msra.gmra.mxu0 %v2014_v34 }
 0x91b   :  { %v1908_v39 = vpop.f32.mrf.mxu1  ;;  %v1976_v40 = vpop.f32.mrf.mxu0  ;;  %3219 = vmatpush3.bf16.msra.mxu1 %v3378_v32  ;;  %3182 = vmatprep.mubr.msk.bf16.mxu1 %vm3775_vm11, %v3773_v38  ;;  %v2790_v32 = vld [vmem:[%s4263_s20] ss:$0 sm:$0xff] }
 0x91c   :  { %1922 = vst [vmem:[#allocation3 + $0x14] sm:$0xff] %v1908_v39  ;;  %1990 = vst [vmem:[#allocation4 + $0x14] sm:$0xff] %v1976_v40  ;;  %3220 = vmatprep.subr.bf16.mxu1 %v3773_v38  ;;  %3210 = vmatprep.mubr.msk.bf16.mxu0 %vm3775_vm11, %v3773_v38 }
 0x91d   :  { %v3155_v42 = vpop.f32.mrf.mxu1  ;;  %v3161_v43 = vpop.f32.mrf.mxu0  ;;  %3247 = vmatpush3.bf16.msra.mxu0 %v3386_v63 }
 0x91e   :  { %3248 = vmatprep.subr.bf16.mxu0 %v3773_v38 }
 0x91f   :  { %v1911_v44 = vpop.f32.mrf.mxu1  ;;  %v1979_v45 = vpop.f32.mrf.mxu0  ;;  %3221 = vmatpush3.bf16.msra.mxu1 %v3379_v41 }
 0x920   :  { %1923 = vst [vmem:[#allocation3 + $0x1c] sm:$0xff] %v1911_v44  ;;  %1991 = vst [vmem:[#allocation4 + $0x1c] sm:$0xff] %v1979_v45  ;;  %3222 = vmatprep.subr.bf16.mxu1 %v3773_v38 }
 0x921   :  { %3249 = vmatpush3.bf16.msra.mxu0 %v3387_v0 }
 0x922   :  { %3250 = vmatprep.subr.bf16.mxu0 %v3773_v38 }
 0x923   :  { %3223 = vmatpush3.bf16.msra.mxu1 %v3380_v46  ;;  %v1995_v48 = vld [vmem:[#allocation3 + $0x10] sm:$0xff]  ;;  %v2019_v50 = vld [vmem:[#allocation4 + $0x10] sm:$0xff] }
 0x924   :  { %3224 = vmatprep.subr.bf16.mxu1 %v3773_v38 }
 0x927   :  { %v2020_v51 = vld [vmem:[#allocation4 + $0x18] sm:$0xff]  ;;  %v1996_v52 = vld [vmem:[#allocation3 + $0x18] sm:$0xff]  ;;  %3225 = vmatpush3.bf16.msra.mxu1 %v3381_v47  ;;  %v2021_v57 = vld [vmem:[#allocation4 + $0x20] sm:$0xff] }
 0x928   :  { %v2039_v53 = vpack.c.bf16 %v2020_v51, %v2019_v50  ;;  %v2015_v54 = vpack.c.bf16 %v1996_v52, %v1995_v48  ;;  %3226 = vmatprep.subr.bf16.mxu1 %v3773_v38  ;;  %v1997_v56 = vld [vmem:[#allocation3 + $0x20] sm:$0xff]  ;;  %v2040_v60 = vpack.c.bf16 %v2021_v57, %v2021_v57 }
 0x929   :  { %v2016_v58 = vpack.c.bf16 %v1997_v56, %v1997_v56 }
 0x92a   :  { %3183 = vmatmul.mubr.bf16.gmra.mxu1 %v2039_v53  ;;  %3211 = vmatmul.mubr.bf16.gmra.mxu0 %v2015_v54 }
 0x92b   :  { %3227 = vmatpush3.bf16.msra.mxu1 %v3382_v49  ;;  %3186 = vmatprep.mubr.msk.bf16.mxu1 %vm3775_vm11, %v3773_v38 }
 0x92c   :  { %3228 = vmatprep.subr.bf16.mxu1 %v3773_v38  ;;  %3214 = vmatprep.mubr.msk.bf16.mxu0 %vm3775_vm11, %v3773_v38 }
 0x92f   :  { %3229 = vmatpush3.bf16.msra.mxu1 %v3383_v55 }
 0x930   :  { %3230 = vmatprep.subr.bf16.mxu1 %v3773_v38 }
 0x932   :  { %3187 = vmatmul.mubr.bf16.gmra.mxu1 %v2040_v60  ;;  %3215 = vmatmul.mubr.bf16.gmra.mxu0 %v2016_v58 }
 0x933   :  { %3231 = vmatpush3.bf16.msra.mxu1 %v3384_v59  ;;  %3234 = vmatprep.mubr.msk.bf16.mxu1 %vm3775_vm11, %v3773_v38 }
 0x934   :  { %3232 = vmatprep.subr.bf16.mxu1 %v3773_v38  ;;  %3262 = vmatprep.mubr.msk.bf16.mxu0 %vm3775_vm11, %v3773_v38 }
 0x937   :  { %3233 = vmatpush3.bf16.msra.mxu1 %v3385_v61 }
 0x93a   :  { %3235 = vmatmul.mubr.bf16.vlgmr.msra.gmra.mxu1 %v4108_v13  ;;  %v3388_v13 = vld [vmem:[#allocation27 + $0x28] sm:$0xff]  }
 0x93b   :  { %3238 = vmatprep.mubr.msk.bf16.mxu1 %vm3775_vm11, %v3773_v38  ;;  %3251 = vmatpush3.bf16.msra.mxu0 %v3388_v13 }
 0x93c   :  { %3252 = vmatprep.subr.bf16.mxu0 %v3773_v38 }
 0x93f   :  { %3253 = vmatpush3.bf16.msra.mxu0 %v3389_v5 }
 0x940   :  { %3254 = vmatprep.subr.bf16.mxu0 %v3773_v38 }
 0x942   :  { %3239 = vmatmul.mubr.bf16.gmra.mxu1 %v2271_v8  ;;  %v3392_v8 = vld [vmem:[#allocation27 + $0x8] sm:$0xff]  }
 0x943   :  { %3242 = vmatprep.mubr.msk.bf16.mxu1 %vm3775_vm11, %v3773_v38  ;;  %3255 = vmatpush3.bf16.msra.mxu0 %v3390_v6 }
 0x944   :  { %3256 = vmatprep.subr.bf16.mxu0 %v3773_v38 }
 0x947   :  { %3257 = vmatpush3.bf16.msra.mxu0 %v3391_v7 }
 0x948   :  { %3258 = vmatprep.subr.bf16.mxu0 %v3773_v38 }
 0x94a   :  { %3243 = vmatmul.mubr.bf16.gmra.mxu1 %v2272_v62 }
 0x94b   :  { %3259 = vmatpush3.bf16.msra.mxu0 %v3392_v8 }
 0x94c   :  { %3260 = vmatprep.subr.bf16.mxu0 %v3773_v38 }
 0x94f   :  { %3261 = vmatpush3.bf16.msra.mxu0 %v3393_v37 }
 0x9da   :  { %v2123_v1 = vpop.f32.mrf.mxu1  ;;  %v2227_v2 = vpop.f32.mrf.mxu0 }
 0x9db   :  { %v2228_v30 = vadd.f32 %v2227_v2, %v2123_v1 }
 0x9dc   :  { %v3180_v3 = vpop.f32.mrf.mxu1  ;;  %v3208_v4 = vpop.f32.mrf.mxu0 }
 0x9de   :  { %v2126_v9 = vpop.f32.mrf.mxu1  ;;  %v2230_v10 = vpop.f32.mrf.mxu0 }
 0x9df   :  { %v2231_v35 = vadd.f32 %v2230_v10, %v2126_v9 }
 0x9e0   :  { %v3181_v11 = vpop.f32.mrf.mxu1  ;;  %v3209_v12 = vpop.f32.mrf.mxu0 }
 0x9ea   :  { %v2131_v14 = vpop.f32.mrf.mxu1  ;;  %v2235_v15 = vpop.f32.mrf.mxu0 }
 0x9eb   :  { %v2236_v43 = vadd.f32 %v2235_v15, %v2131_v14 }
 0x9ec   :  { %v3184_v16 = vpop.f32.mrf.mxu1  ;;  %v3212_v17 = vpop.f32.mrf.mxu0 }
 0x9ee   :  { %v2134_v18 = vpop.f32.mrf.mxu1  ;;  %v2238_v19 = vpop.f32.mrf.mxu0 }
 0x9ef   :  { %v2239_v50 = vadd.f32 %v2238_v19, %v2134_v18 }
 0x9f0   :  { %v3185_v20 = vpop.f32.mrf.mxu1  ;;  %v3213_v21 = vpop.f32.mrf.mxu0 }
 0x9f2   :  { %v2139_v22 = vpop.f32.mrf.mxu1  ;;  %v2243_v23 = vpop.f32.mrf.mxu0 }
 0x9f3   :  { %v2244_v57 = vadd.f32 %v2243_v23, %v2139_v22  ;;  %v2796_v23 = vld [vmem:[%s4265_s22] ss:$0 sm:$0xff]  ;;  %s3776_s22 = smov [#allocation28]  }
 0x9f4   :  { %v3188_v24 = vpop.f32.mrf.mxu1  ;;  %v3216_v25 = vpop.f32.mrf.mxu0  ;;  %s2636_s5 = sshll.u32 %s3776_s22, 4  ;;  %s2637_s5 = int_to_ptr.vmem [resolvable:$true] %s2636_s5 }
 0x9f5   :  { %s3722_s9 = scalar_lea.vmem %s2637_s5, 640  ;;  %p3727_p10 = scmp.lt.s32.totalorder %s2637_s5, %s2637_s5 }
 0x9f6   :  { %v2142_v26 = vpop.f32.mrf.mxu1  ;;  %v2246_v27 = vpop.f32.mrf.mxu0  ;;  %p3723_p9 = scmp.ne.s32.totalorder %s2637_s5, %s3722_s9  ;;  %p3728_p11 = scmp.lt.s32.totalorder %s3722_s9, %s3722_s9 }
 0x9f8   :  { %v3189_v28 = vpop.f32.mrf.mxu1  ;;  %v3217_v29 = vpop.f32.mrf.mxu0  ;;  %p3729_p12 = por %p3728_p11, %p3727_p10 }
 0x9fa   :  { %v2355_v31 = vpop.f32.mrf.mxu1  ;;  %p3730_p13 = pnand %p3729_p12, %p3723_p9 }
 0x9fb   :  { %v2377_v33 = vadd.f32 %v2355_v31, %v2228_v30 }
 0x9fc   :  { %v3236_v34 = vpop.f32.mrf.mxu1 }
 0x9fd   :  { %v2389_v36 = vadd.f32 %v2790_v32, %v2377_v33 }
 0x9fe   :  { %v2358_v39 = vpop.f32.mrf.mxu1 }
 0x9ff   :  { %v2399_v40 = vmin.f32 %v2389_v36, 0.0  ;;  %v2378_v41 = vadd.f32 %v2358_v39, %v2231_v35  ;;  %vm2394_vm5 = vcmp.gt.f32.partialorder %v2389_v36, 0.0 }
 0xa00   :  { %v3237_v42 = vpop.f32.mrf.mxu1 }
 0xa01   :  { %v2404_v44 = vmul.f32 1.442695, %v2399_v40  ;;  %v2390_v45 = vadd.f32 %v2790_v32, %v2378_v41 }
 0xa02   :  { %v2363_v46 = vpop.f32.mrf.mxu1 }
 0xa03   :  { %3440 = vpow2.f32 %v2404_v44  ;;  %v2400_v47 = vmin.f32 %v2390_v45, 0.0  ;;  %v2379_v48 = vadd.f32 %v2363_v46, %v2236_v43  ;;  %vm2395_vm9 = vcmp.gt.f32.partialorder %v2390_v45, 0.0 }
 0xa04   :  { %v3240_v49 = vpop.f32.mrf.mxu1 }
 0xa05   :  { %v2406_v51 = vmul.f32 1.442695, %v2400_v47  ;;  %v2391_v52 = vadd.f32 %v2790_v32, %v2379_v48 }
 0xa06   :  { %v2366_v53 = vpop.f32.mrf.mxu1 }
 0xa07   :  { %3442 = vpow2.f32 %v2406_v51  ;;  %v2401_v54 = vmin.f32 %v2391_v52, 0.0  ;;  %v2380_v55 = vadd.f32 %v2366_v53, %v2239_v50  ;;  %vm2396_vm14 = vcmp.gt.f32.partialorder %v2391_v52, 0.0 }
 0xa08   :  { %v3241_v56 = vpop.f32.mrf.mxu1 }
 0xa09   :  { %v2408_v58 = vmul.f32 1.442695, %v2401_v54  ;;  %v2392_v59 = vadd.f32 %v2790_v32, %v2380_v55 }
 0xa0a   :  { %v2371_v60 = vpop.f32.mrf.mxu1 }
 0xa0b   :  { %3444 = vpow2.f32 %v2408_v58  ;;  %v2402_v61 = vmin.f32 %v2392_v59, 0.0  ;;  %v2381_v62 = vadd.f32 %v2371_v60, %v2244_v57  ;;  %vm2397_vm15 = vcmp.gt.f32.partialorder %v2392_v59, 0.0 }
 0xa0c   :  { %v3244_v63 = vpop.f32.mrf.mxu1 }
 0xa0d   :  { %v2410_v0 = vmul.f32 1.442695, %v2402_v61  ;;  %v2393_v13 = vadd.f32 %v2790_v32, %v2381_v62 }
 0xa0e   :  { %v2374_v5 = vpop.f32.mrf.mxu1 }
 0xa0f   :  { %3446 = vpow2.f32 %v2410_v0  ;;  %v2403_v6 = vmin.f32 %v2393_v13, 0.0  ;;  %vm2398_vm0 = vcmp.gt.f32.partialorder %v2393_v13, 0.0 }
 0xa10   :  { %v3441_v7 = vpop.eup %3440  ;;  %v3245_v8 = vpop.f32.mrf.mxu1 }
 0xa11   :  { %v2412_v37 = vmul.f32 1.442695, %v2403_v6  ;;  %v2791_v1 = vadd.f32 -1.0, %v3441_v7 }
 0xa13   :  { %3448 = vpow2.f32 %v2412_v37  ;;  %v2419_v4 = vsel %vm2394_vm5, %v2389_v36, %v2791_v1 }
 0xa14   :  { %v3443_v2 = vpop.eup %3442 }
 0xa15   :  { %v2792_v3 = vadd.f32 -1.0, %v3443_v2 }
 0xa17   :  { %v2420_v9 = vsel %vm2395_vm9, %v2390_v45, %v2792_v3 }
 0xa18   :  { %v3445_v10 = vpop.eup %3444  ;;  %v2440_v11 = vpack.c.bf16 %v2420_v9, %v2419_v4 }
 0xa19   :  { %v2793_v12 = vadd.f32 -1.0, %v3445_v10 }
 0xa1a   :  { %3263 = vmatmul.mubr.bf16.vlgmr.msra.gmra.mxu0 %v2440_v11 }
 0xa1b   :  { %3266 = vmatprep.mubr.msk.bf16.mxu0 %vm3775_vm11, %v3773_v38  ;;  %v2421_v16 = vsel %vm2396_vm14, %v2391_v52, %v2793_v12 }
 0xa1c   :  { %v3447_v14 = vpop.eup %3446 }
 0xa1d   :  { %v2794_v15 = vadd.f32 -1.0, %v3447_v14 }
 0xa1f   :  { %v2422_v17 = vsel %vm2397_vm15, %v2392_v59, %v2794_v15 }
 0xa20   :  { %v3449_v18 = vpop.eup %3448  ;;  %v2441_v19 = vpack.c.bf16 %v2422_v17, %v2421_v16 }
 0xa21   :  { %v2795_v20 = vadd.f32 -1.0, %v3449_v18 }
 0xa22   :  { %3267 = vmatmul.mubr.bf16.gmra.mxu0 %v2441_v19 }
 0xa23   :  { %3270 = vmatprep.mubr.msk.bf16.mxu0 %vm3775_vm11, %v3773_v38  ;;  %v2423_v21 = vsel %vm2398_vm0, %v2393_v13, %v2795_v20 }
 0xa24   :  { %v2442_v22 = vpack.c.bf16 %v2423_v21, %v2423_v21 }
 0xa2a   :  { %3271 = vmatmul.mubr.bf16.gmra.mxu0 %v2442_v22 }
 0xada   :  { %v2532_v24 = vpop.f32.mrf.mxu0 }
 0xadb   :  { %v2533_v25 = vadd.f32 %v2796_v23, %v2532_v24 }
 0xadc   :  { %v3264_v26 = vpop.f32.mrf.mxu0 }
 0xadd   :  { %v2559_v27 = vmin.f32 %v2533_v25, 0.0  ;;  %vm2554_vm1 = vcmp.gt.f32.partialorder %v2533_v25, 0.0 }
 0xade   :  { %v2535_v28 = vpop.f32.mrf.mxu0 }
 0xadf   :  { %v2536_v29 = vadd.f32 %v2796_v23, %v2535_v28  ;;  %v2564_v30 = vmul.f32 1.442695, %v2559_v27 }
 0xae0   :  { %v3265_v31 = vpop.f32.mrf.mxu0 }
 0xae1   :  { %v2560_v32 = vmin.f32 %v2536_v29, 0.0  ;;  %3450 = vpow2.f32 %v2564_v30  ;;  %vm2555_vm11 = vcmp.gt.f32.partialorder %v2536_v29, 0.0 }
 0xae2   :  { %v2540_v33 = vpop.f32.mrf.mxu0 }
 0xae3   :  { %v2566_v34 = vmul.f32 1.442695, %v2560_v32  ;;  %v2541_v38 = vadd.f32 %v2796_v23, %v2540_v33 }
 0xae4   :  { %v3268_v35 = vpop.f32.mrf.mxu0 }
 0xae5   :  { %3452 = vpow2.f32 %v2566_v34  ;;  %v2561_v36 = vmin.f32 %v2541_v38, 0.0  ;;  %vm2556_vm2 = vcmp.gt.f32.partialorder %v2541_v38, 0.0 }
 0xae6   :  { %v2543_v39 = vpop.f32.mrf.mxu0 }
 0xae7   :  { %v2568_v40 = vmul.f32 1.442695, %v2561_v36  ;;  %v2544_v41 = vadd.f32 %v2796_v23, %v2543_v39 }
 0xae8   :  { %v3269_v42 = vpop.f32.mrf.mxu0 }
 0xae9   :  { %3454 = vpow2.f32 %v2568_v40  ;;  %v2562_v43 = vmin.f32 %v2544_v41, 0.0  ;;  %vm2557_vm3 = vcmp.gt.f32.partialorder %v2544_v41, 0.0 }
 0xaea   :  { %v2548_v44 = vpop.f32.mrf.mxu0 }
 0xaeb   :  { %v2570_v45 = vmul.f32 1.442695, %v2562_v43  ;;  %v2549_v46 = vadd.f32 %v2796_v23, %v2548_v44 }
 0xaec   :  { %v3272_v47 = vpop.f32.mrf.mxu0 }
 0xaed   :  { %3456 = vpow2.f32 %v2570_v45  ;;  %v2563_v48 = vmin.f32 %v2549_v46, 0.0  ;;  %vm2558_vm4 = vcmp.gt.f32.partialorder %v2549_v46, 0.0 }
 0xaee   :  { %v2551_v49 = vpop.f32.mrf.mxu0  ;;  %v3451_v52 = vpop.eup %3450 }
 0xaef   :  { %v2572_v50 = vmul.f32 1.442695, %v2563_v48  ;;  %v2805_v55 = vadd.f32 -1.0, %v3451_v52 }
 0xaf0   :  { %v3273_v51 = vpop.f32.mrf.mxu0 }
 0xaf1   :  { %3458 = vpow2.f32 %v2572_v50  ;;  %v2579_v59 = vsel %vm2554_vm1, %v2533_v25, %v2805_v55 }
 0xaf2   :  { %v3453_v53 = vpop.eup %3452  ;;  %v2595_v0 = vmul.f32 %v2579_v59, %v2579_v59 }
 0xaf3   :  { %v2806_v54 = vadd.f32 -1.0, %v3453_v53 }
 0xaf5   :  { %v2580_v57 = vsel %vm2555_vm11, %v2536_v29, %v2806_v54 }
 0xaf6   :  { %v3455_v56 = vpop.eup %3454  ;;  %v2596_v62 = vmul.f32 %v2580_v57, %v2580_v57  ;;  %v2584_v13 = vadd.f32 %v2580_v57, %v2579_v59 }
 0xaf7   :  { %v2807_v58 = vadd.f32 -1.0, %v3455_v56 }
 0xaf8   :  { %v2600_v8 = vadd.f32 %v2596_v62, %v2595_v0 }
 0xaf9   :  { %v2581_v60 = vsel %vm2556_vm2, %v2541_v38, %v2807_v58 }
 0xafa   :  { %v3457_v61 = vpop.eup %3456  ;;  %v2597_v5 = vmul.f32 %v2581_v60, %v2581_v60  ;;  %v2585_v37 = vadd.f32 %v2584_v13, %v2581_v60 }
 0xafb   :  { %v2808_v63 = vadd.f32 -1.0, %v3457_v61 }
 0xafc   :  { %v2601_v3 = vadd.f32 %v2600_v8, %v2597_v5 }
 0xafd   :  { %v2582_v6 = vsel %vm2557_vm3, %v2544_v41, %v2808_v63 }
 0xafe   :  { %v3459_v7 = vpop.eup %3458  ;;  %v2598_v1 = vmul.f32 %v2582_v6, %v2582_v6  ;;  %v2586_v4 = vadd.f32 %v2585_v37, %v2582_v6 }
 0xaff   :  { %v2809_v2 = vadd.f32 -1.0, %v3459_v7 }
 0xb00   :  { %v2602_v10 = vadd.f32 %v2601_v3, %v2598_v1 }
 0xb01   :  { %v2583_v9 = vsel %vm2558_vm4, %v2549_v46, %v2809_v2 }
 0xb02   :  { %v2587_v11 = vadd.f32 %v2586_v4, %v2583_v9  ;;  %v2599_v12 = vmul.f32 %v2583_v9, %v2583_v9 }
 0xb04   :  { %v2588_v14 = vrot.slane %v2587_v11, 4  ;;  %v2603_v15 = vadd.f32 %v2602_v10, %v2599_v12 }
 0xb06   :  { %v2589_v16 = vadd.f32 %v2588_v14, %v2587_v11  ;;  %v2604_v17 = vrot.slane %v2603_v15, 4 }
 0xb08   :  { %v2590_v18 = vrot.slane %v2589_v16, 2  ;;  %v2605_v19 = vadd.f32 %v2604_v17, %v2603_v15 }
 0xb0a   :  { %v2591_v20 = vadd.f32 %v2590_v18, %v2589_v16  ;;  %v2606_v21 = vrot.slane %v2605_v19, 2 }
 0xb0c   :  { %v2592_v22 = vrot.slane %v2591_v20, 1  ;;  %v2607_v23 = vadd.f32 %v2606_v21, %v2605_v19 }
 0xb0e   :  { %v2593_v24 = vadd.f32 %v2592_v22, %v2591_v20  ;;  %v2608_v25 = vrot.slane %v2607_v23, 1 }
 0xb10   :  { %v2594_v26 = vmul.f32 0.025, %v2593_v24  ;;  %v2609_v27 = vadd.f32 %v2608_v25, %v2607_v23 }
 0xb12   :  { %v2610_v28 = vmul.f32 0.025, %v2609_v27  ;;  %v2611_v29 = vmul.f32 %v2594_v26, %v2594_v26  ;;  %v2618_v33 = vsub.f32 %v2583_v9, %v2594_v26  ;;  %v2614_v34 = vsub.f32 %v2579_v59, %v2594_v26 }
 0xb13   :  { %v2615_v38 = vsub.f32 %v2580_v57, %v2594_v26  ;;  %v2616_v35 = vsub.f32 %v2581_v60, %v2594_v26  ;;  %v2617_v39 = vsub.f32 %v2582_v6, %v2594_v26 }
 0xb14   :  { %v2612_v30 = vsub.f32 %v2610_v28, %v2611_v29 }
 0xb16   :  { %v2613_v31 = vmax.f32 %v2612_v30, 0.0 }
 0xb18   :  { %v2619_v32 = vadd.f32 1e-05, %v2613_v31 }
 0xb1a   :  { %3460 = vrsqrt.f32 %v2619_v32 }
 0xb27   :  { %v3461_v36 = vpop.eup %3460 }
 0xb28   :  { %v2625_v40 = vmul.f32 %v3461_v36, %v2618_v33  ;;  %v2621_v41 = vmul.f32 %v3461_v36, %v2614_v34  ;;  %v2622_v42 = vmul.f32 %v3461_v36, %v2615_v38  ;;  %v2623_v43 = vmul.f32 %v3461_v36, %v2616_v35 }
 0xb29   :  { %v2624_v44 = vmul.f32 %v3461_v36, %v2617_v39 }
 0xb2a   :  { %2630 = vst [vmem:[#allocation28 + $0x20] sm:$0xff] %v2625_v40  ;;  %2626 = vst [vmem:[#allocation28] sm:$0xff] %v2621_v41 }
 0xb2b   :  { %2627 = vst [vmem:[#allocation28 + $0x8] sm:$0xff] %v2622_v42  ;;  %2628 = vst [vmem:[#allocation28 + $0x10] sm:$0xff] %v2623_v43 }
 0xb2c   :  { %2629 = vst [vmem:[#allocation28 + $0x18] sm:$0xff] %v2624_v44 }
 0xb2d   :  { %3733 = shalt.err (!%p3730_p13)
}
 0xb2e   :  { %s3777_s1 = smov 128   ;;  %s3778_s10 = smov 8  }
 0xb2f   :  { %2642 = dma.vmem_to_hbm [thread:$0]  %s2637_s5, 640, %s4266_s23, [#allocation9], %s3777_s1, %s3777_s1, %s3778_s10  }
 0xb30   :  { %3756 = dma.done.wait [#allocation9], 640  }
 0xb31   :  { %3757 = vsyncadd [#allocation9], 4294966656 }
 0xb32   :  { %2646 = vsyncpa [#allocation8], 1 }
 0xb33   :  { %2647 = vsyncpa [#allocation11], 1 }
 0xb34   :  { %2648 = vsyncpa [#allocation14], 1 }
 0xb35   :  { %2649 = vsyncpa [#allocation17], 1 }
 0xb36   :  { %2650 = vsyncpa [#allocation20], 1 }
 0xb37   :  { %2651 = vsyncpa [#allocation23], 1 }
 0xb38   :  { %2652 = vsyncpa [#allocation26], 1 }
 0xb39   :  { %2653 = vsyncpa [#allocation9], 1 }

</bundles_post_ra>
